<compile_context>
chip_gen: v5e
topology: v5e:2x2
jax: 0.10.0
libtpu: 0.0.40
codegen_flags: <defaults>
</compile_context>

<pallas_src>
import functools

import jax
import jax.numpy as jnp
from jax.experimental import pallas as pl
from jax.experimental.pallas import tpu as pltpu


# --------------------------------------------------------------------------
# Fused MBConv kernel.  One grid step processes B_blk images entirely in VMEM.
# Activations are lane-dense: (B, H, W*C) with W*C on the 128-lane axis.
# --------------------------------------------------------------------------
def _mbconv_kernel(*refs, k, stride, B, H, Ho, Wo, Hp, Hd, Wd,
                   ph0, pw0, Cmid, has_expand, has_se, do_skip):
    it = iter(refs)
    x_ref = next(it)
    if has_expand:
        w_exp_ref, b_exp_ref = next(it), next(it)
    w_dw_ref, b_dw_ref = next(it), next(it)
    if has_se:
        w_se1_ref, b_se1_ref = next(it), next(it)
        w_se2_ref, b_se2_ref = next(it), next(it)
    w_proj_ref, b_proj_ref = next(it), next(it)
    o_ref = next(it)
    pad_ref = next(it)                      # VMEM scratch: (B, Hp, Wp*Cmid) f32

    WpC = pad_ref.shape[-1]                 # Wp * Cmid

    # ---- expand 1x1 conv (block-diagonal, lane-dense) + Swish --------------
    x2d = x_ref[...].reshape(B * H, -1)     # (B*H, W*Cin)
    if has_expand:
        h = jnp.dot(x2d.astype(jnp.bfloat16), w_exp_ref[...],
                    preferred_element_type=jnp.float32)
        h = h + b_exp_ref[...]
        h = h * jax.nn.sigmoid(h)           # Swish (f32 VPU/EUP)
    else:
        h = x2d                             # Cmid == Cin
    WC = h.shape[-1]                        # W * Cmid

    # ---- stage TF-SAME padded activation in the VMEM scratch ---------------
    # Zero ONLY the halo border (interior is fully overwritten every step).
    if ph0 > 0:
        pad_ref[:, :ph0, :] = jnp.zeros((B, ph0, WpC), jnp.float32)
    if Hp - ph0 - H > 0:
        pad_ref[:, ph0 + H:, :] = jnp.zeros((B, Hp - ph0 - H, WpC), jnp.float32)
    if pw0 > 0:
        pad_ref[:, ph0:ph0 + H, :pw0 * Cmid] = jnp.zeros(
            (B, H, pw0 * Cmid), jnp.float32)
    if WpC - pw0 * Cmid - WC > 0:
        pad_ref[:, ph0:ph0 + H, pw0 * Cmid + WC:] = jnp.zeros(
            (B, H, WpC - pw0 * Cmid - WC), jnp.float32)
    pad_ref[:, ph0:ph0 + H, pw0 * Cmid:pw0 * Cmid + WC] = h.reshape(B, H, WC)

    # ---- depthwise kxk conv: k*k taps read by slicing the pad Ref ----------
    w_dw = w_dw_ref[...]                    # (k*k, Wd*Cmid), BN folded, W-tiled
    acc = jnp.zeros((B, Hd, Wd * Cmid), jnp.float32)
    for dh in range(k):
        for dw in range(k):
            patch = pad_ref[:, pl.ds(dh, Hd), pl.ds(dw * Cmid, Wd * Cmid)]
            acc = acc + patch * w_dw[dh * k + dw][None, None, :]

    if stride == 1:
        y = acc                                              # (B, Ho, Wo*Cmid)
    else:
        # TODO(synk): stride>1 subsamples the dense stride-1 result; a strided
        # lane gather would avoid the ~stride^2 extra depthwise MACs.
        y = acc[:, ::stride, :][:, :Ho, :]
        y = y.reshape(B, Ho, Wd, Cmid)[:, :, ::stride, :][:, :, :Wo, :]
        y = y.reshape(B, Ho, Wo * Cmid)

    y = y + b_dw_ref[...]
    y = y * jax.nn.sigmoid(y)               # Swish

    # ---- squeeze-and-excitation (VPU/XLU path; no 1-row MXU matmuls) -------
    if has_se:
        row_sum = jnp.sum(y, axis=1)                         # (B, Wo*Cmid)
        pooled = jnp.sum(row_sum.reshape(B, Wo, Cmid), axis=1) * (1.0 / (Ho * Wo))
        s1 = jnp.sum(pooled[:, :, None] * w_se1_ref[...][None, :, :], axis=1)
        s1 = s1 + b_se1_ref[...]
        s1 = s1 * jax.nn.sigmoid(s1)                         # Swish
        s2 = jnp.sum(s1[:, :, None] * w_se2_ref[...][None, :, :], axis=1)
        s2 = s2 + b_se2_ref[...]
        gate = jnp.tile(jax.nn.sigmoid(s2), (1, Wo))         # (B, Wo*Cmid)
        y = y * gate[:, None, :]

    # ---- project 1x1 conv (block-diagonal, lane-dense) + residual ----------
    out = jnp.dot(y.reshape(B * Ho, Wo * Cmid).astype(jnp.bfloat16),
                  w_proj_ref[...], preferred_element_type=jnp.float32)
    out = out + b_proj_ref[...]
    if do_skip:
        # drop_connect is nn.Identity() in the reference module.  Re-read the
        # input here so x is not live across the whole body.
        out = out + x_ref[...].reshape(B * H, -1)
    o_ref[...] = out.reshape(B, Ho, -1).astype(o_ref.dtype)   # lane-dense vst


# --------------------------------------------------------------------------
# Wrapper: one fused pallas_call per MBConv
# --------------------------------------------------------------------------
def _const_spec(shape):
    nd = len(shape)
    return pl.BlockSpec(shape, lambda n, _nd=nd: (0,) * _nd)


def _block_diag(w, reps):
    """(Ci, Co) -> block-diagonal (reps*Ci, reps*Co): reps copies of w."""
    ci, co = w.shape
    eye = jnp.eye(reps, dtype=w.dtype)
    return jnp.einsum('pq,io->piqo', eye, w).reshape(reps * ci, reps * co)


def mbconv_forward(x, p, *, expand, kernel, stride, skip, se_ratio):
    """x: (N, H, W*Cin) lane-dense NHWC activations (f32)."""
    has_expand = expand != 1
    has_se = se_ratio > 0
    Cmid = p["w_dw"].shape[-1]
    Cin = p["w_exp"].shape[0] if has_expand else Cmid
    Cout = p["w_proj"].shape[1]
    N, H, WCin = x.shape
    W = WCin // Cin
    do_skip = skip and stride == 1 and Cin == Cout

    k = kernel
    Ho = -(-H // stride)
    Wo = -(-W // stride)
    pad_h = max((Ho - 1) * stride + k - H, 0)       # TF-style SAME padding
    pad_w = max((Wo - 1) * stride + k - W, 0)
    ph0, pw0 = pad_h // 2, pad_w // 2               # extra pad at the end
    Hp, Wp = H + pad_h, W + pad_w
    Hd, Wd = Hp - k + 1, Wp - k + 1                 # dense (stride-1) extent

    # Batch several images per grid step, but keep >= 2 grid steps when N
    # allows it so the "parallel" axis can feed both v7x TensorCores.
    B_blk = N // 2 if (N % 2 == 0 and N > 2) else 1
    grid = (N // B_blk,)

    # ---- lane-dense parameter packing (outside the kernel) -----------------
    inputs = [x]
    in_specs = [pl.BlockSpec((B_blk, H, W * Cin), lambda n: (n, 0, 0))]
    if has_expand:
        w_exp_big = _block_diag(p["w_exp"], W).astype(jnp.bfloat16)
        b_exp_t = jnp.tile(p["b_exp"], W).reshape(1, W * Cmid)
        inputs += [w_exp_big, b_exp_t]
        in_specs += [_const_spec(w_exp_big.shape), _const_spec(b_exp_t.shape)]
    w_dw_t = jnp.tile(p["w_dw"].reshape(k * k, Cmid), (1, Wd))
    b_dw_t = jnp.tile(p["b_dw"], Wo).reshape(1, 1, Wo * Cmid)
    inputs += [w_dw_t, b_dw_t]
    in_specs += [_const_spec(w_dw_t.shape), _const_spec(b_dw_t.shape)]
    if has_se:
        cse = p["w_se1"].shape[1]
        b_se1 = p["b_se1"].reshape(1, cse)
        b_se2 = p["b_se2"].reshape(1, Cmid)
        inputs += [p["w_se1"], b_se1, p["w_se2"], b_se2]
        in_specs += [_const_spec(p["w_se1"].shape), _const_spec(b_se1.shape),
                     _const_spec(p["w_se2"].shape), _const_spec(b_se2.shape)]
    w_proj_big = _block_diag(p["w_proj"], Wo).astype(jnp.bfloat16)
    b_proj_t = jnp.tile(p["b_proj"], Wo).reshape(1, Wo * Cout)
    inputs += [w_proj_big, b_proj_t]
    in_specs += [_const_spec(w_proj_big.shape), _const_spec(b_proj_t.shape)]

    kernel_fn = functools.partial(
        _mbconv_kernel, k=k, stride=stride, B=B_blk, H=H, Ho=Ho, Wo=Wo,
        Hp=Hp, Hd=Hd, Wd=Wd, ph0=ph0, pw0=pw0, Cmid=Cmid,
        has_expand=has_expand, has_se=has_se, do_skip=do_skip)

    # Explicit scoped-VMEM budget from the actual block + scratch footprint.
    vmem_bytes = 2 * B_blk * H * W * Cin * 4          # input (double buffered)
    vmem_bytes += 2 * B_blk * Ho * Wo * Cout * 4      # output (double buffered)
    vmem_bytes += B_blk * Hp * Wp * Cmid * 4          # pad scratch
    for a in inputs[1:]:                              # resident weights/biases
        vmem_bytes += 2 * a.size * a.dtype.itemsize
    vmem_limit = int(min(max(2 * vmem_bytes + (8 << 20), 32 << 20), 64 << 20))

    # TODO(synk): for realistic EfficientNet stages (e.g. 112x112, C>=96) add a
    # second grid axis over H row-tiles with a (k-1)-row halo so the fused
    # block fits v7x's 64 MiB VMEM, and switch the 1x1 convs back to plain
    # (rows, C) matmuls once Cmid >= 128 (already lane-dense there).
    return pl.pallas_call(
        kernel_fn,
        out_shape=jax.ShapeDtypeStruct((N, Ho, Wo * Cout), jnp.float32),
        grid=grid,
        in_specs=in_specs,
        out_specs=pl.BlockSpec((B_blk, Ho, Wo * Cout), lambda n: (n, 0, 0)),
        scratch_shapes=[pltpu.VMEM((B_blk, Hp, Wp * Cmid), jnp.float32)],
        compiler_params=pltpu.CompilerParams(
            dimension_semantics=("parallel",),
            vmem_limit_bytes=vmem_limit),
    )(*inputs)


def mbblock_forward(x, params_list, cfg):
    """x: (N, H, W*C) lane-dense; applies num_repeat fused MBConv kernels."""
    for i, p in enumerate(params_list):
        stride = cfg["stride"] if i == 0 else 1
        x = mbconv_forward(x, p, expand=cfg["expand"], kernel=cfg["kernel"],
                           stride=stride, skip=cfg["skip"],
                           se_ratio=cfg["se_ratio"])
    return x


def mbblock_apply(x_nchw, params_list, cfg):
    """NCHW (PyTorch) boundary -> lane-dense internal layout -> NCHW."""
    N, Cin, H, W = x_nchw.shape
    x = jnp.transpose(x_nchw, (0, 2, 3, 1)).reshape(N, H, W * Cin)
    y = mbblock_forward(x, params_list, cfg)
    Cout = params_list[-1]["w_proj"].shape[1]
    Ho, Wo = y.shape[1], y.shape[2] // Cout
    return jnp.transpose(y.reshape(N, Ho, Wo, Cout), (0, 3, 1, 2))


# --------------------------------------------------------------------------
# Parameter setup (deterministic, synthetic; BN folded into weights/bias)
# --------------------------------------------------------------------------
def _fold_bn(gamma, beta, mean, var, eps):
    scale = gamma / jnp.sqrt(var + eps)
    return scale, beta - mean * scale


def _bn_params(key, c, eps):
    gamma = 1.0 + 0.1 * jax.random.normal(jax.random.fold_in(key, 0), (c,), jnp.float32)
    beta = 0.1 * jax.random.normal(jax.random.fold_in(key, 1), (c,), jnp.float32)
    mean = 0.1 * jax.random.normal(jax.random.fold_in(key, 2), (c,), jnp.float32)
    var = 1.0 + 0.1 * jax.random.uniform(jax.random.fold_in(key, 3), (c,), jnp.float32)
    return _fold_bn(gamma, beta, mean, var, eps)


def init_mbconv_params(key, in_, out_, expand, kernel, se_ratio):
    """Inference-mode params with BatchNorm folded into the conv weights."""
    mid = in_ * expand
    cse = int(in_ * se_ratio)
    ks = jax.random.split(key, 10)
    p = {}
    if expand != 1:
        w = 0.2 * jax.random.normal(ks[0], (in_, mid), jnp.float32)
        s, b = _bn_params(ks[1], mid, 1e-3)            # conv_bn_act eps
        p["w_exp"] = w * s[None, :]
        p["b_exp"] = b
    w = 0.2 * jax.random.normal(ks[2], (kernel, kernel, mid), jnp.float32)
    s, b = _bn_params(ks[3], mid, 1e-3)
    p["w_dw"] = w * s[None, None, :]
    p["b_dw"] = b
    if se_ratio > 0:
        p["w_se1"] = 0.2 * jax.random.normal(ks[4], (mid, cse), jnp.float32)
        p["b_se1"] = 0.1 * jax.random.normal(ks[5], (cse,), jnp.float32)
        p["w_se2"] = 0.2 * jax.random.normal(ks[6], (cse, mid), jnp.float32)
        p["b_se2"] = 0.1 * jax.random.normal(ks[7], (mid,), jnp.float32)
    w = 0.2 * jax.random.normal(ks[8], (mid, out_), jnp.float32)
    s, b = _bn_params(ks[9], out_, 1e-5)               # plain BatchNorm2d eps
    p["w_proj"] = w * s[None, :]
    p["b_proj"] = b
    return p


# --------------------------------------------------------------------------
# Pure-JAX f32 reference (matches the PyTorch module in eval mode, BN folded)
# --------------------------------------------------------------------------
def _mbconv_ref(x, p, *, expand, kernel, stride, skip, se_ratio):
    N, H, W, Cin = x.shape
    Cmid = p["w_dw"].shape[-1]
    Cout = p["w_proj"].shape[1]
    if expand != 1:
        h = jnp.einsum('nhwc,cd->nhwd', x, p["w_exp"]) + p["b_exp"]
        h = h * jax.nn.sigmoid(h)
    else:
        h = x
    k = kernel
    Ho, Wo = -(-H // stride), -(-W // stride)
    pad_h = max((Ho - 1) * stride + k - H, 0)
    pad_w = max((Wo - 1) * stride + k - W, 0)
    ph0, pw0 = pad_h // 2, pad_w // 2
    hp = jnp.pad(h, ((0, 0), (ph0, pad_h - ph0), (pw0, pad_w - pw0), (0, 0)))
    y = jnp.zeros((N, Ho, Wo, Cmid), jnp.float32)
    for dh in range(k):
        for dw in range(k):
            y = y + hp[:, dh:dh + (Ho - 1) * stride + 1:stride,
                       dw:dw + (Wo - 1) * stride + 1:stride, :] * p["w_dw"][dh, dw]
    y = y + p["b_dw"]
    y = y * jax.nn.sigmoid(y)
    if se_ratio > 0:
        pooled = jnp.mean(y, axis=(1, 2))
        s1 = pooled @ p["w_se1"] + p["b_se1"]
        s1 = s1 * jax.nn.sigmoid(s1)
        s2 = s1 @ p["w_se2"] + p["b_se2"]
        y = y * jax.nn.sigmoid(s2)[:, None, None, :]
    out = jnp.einsum('nhwc,cd->nhwd', y, p["w_proj"]) + p["b_proj"]
    if skip and stride == 1 and Cin == Cout:
        out = out + x
    return out


# --------------------------------------------------------------------------
# Demo
# --------------------------------------------------------------------------
if __name__ == "__main__":
    key = jax.random.PRNGKey(0)
    kx, kp = jax.random.split(key)

    # MBBlock(in_=8, out_=8, expand=2, kernel=3, stride=1, num_repeat=2,
    #         skip=True, se_ratio=0.5)
    cfg = dict(in_=8, out_=8, expand=2, kernel=3, stride=1,
               num_repeat=2, skip=True, se_ratio=0.5)
    N, Cin, H, W = 2, cfg["in_"], 16, 16

    x_nchw = jax.random.normal(kx, (N, Cin, H, W), jnp.float32)   # PyTorch NCHW

    params_list = []
    for i in range(cfg["num_repeat"]):
        in_c = cfg["in_"] if i == 0 else cfg["out_"]
        params_list.append(init_mbconv_params(
            jax.random.fold_in(kp, i), in_c, cfg["out_"],
            cfg["expand"], cfg["kernel"], cfg["se_ratio"]))

    out = jax.jit(lambda xx: mbblock_apply(xx, params_list, cfg))(x_nchw)
    jax.block_until_ready(out)
    assert out.shape == (N, cfg["out_"], H, W)

    # Verify against the pure-JAX f32 reference (kernel uses bf16 MXU
    # operands for the 1x1 convs -> relaxed tolerance).
    ref = jnp.transpose(x_nchw, (0, 2, 3, 1))
    for i, p in enumerate(params_list):
        s = cfg["stride"] if i == 0 else 1
        ref = _mbconv_ref(ref, p, expand=cfg["expand"], kernel=cfg["kernel"],
                          stride=s, skip=cfg["skip"], se_ratio=cfg["se_ratio"])
    ref = jnp.transpose(ref, (0, 3, 1, 2))
    err = float(jnp.max(jnp.abs(out - ref)))
    assert err < 5e-2, f"max abs err vs f32 reference: {err}"
    print("KERNEL_OK")
</pallas_src>

<mosaic_0001>
module attributes {stable_mosaic.version = 11 : i64} {
  func.func @_mbconv_kernel(%arg0: i32, %arg1: memref<1x16x128xf32, #tpu.memory_space<vmem>>, %arg2: memref<128x256xbf16, #tpu.memory_space<vmem>>, %arg3: memref<1x256xf32, #tpu.memory_space<vmem>>, %arg4: memref<9x256xf32, #tpu.memory_space<vmem>>, %arg5: memref<1x1x256xf32, #tpu.memory_space<vmem>>, %arg6: memref<16x4xf32, #tpu.memory_space<vmem>>, %arg7: memref<1x4xf32, #tpu.memory_space<vmem>>, %arg8: memref<4x16xf32, #tpu.memory_space<vmem>>, %arg9: memref<1x16xf32, #tpu.memory_space<vmem>>, %arg10: memref<256x128xbf16, #tpu.memory_space<vmem>>, %arg11: memref<1x128xf32, #tpu.memory_space<vmem>>, %arg12: memref<1x16x128xf32, #tpu.memory_space<vmem>>, %arg13: memref<1x18x288xf32, #tpu.memory_space<vmem>>) attributes {dimension_semantics = [#tpu.dimension_semantics<parallel>], iteration_bounds = array<i64: 2>, scalar_prefetch = 0 : i64, scratch_operands = 1 : i64, tpu.core_type = #tpu.core_type<tc>, window_params = [{transform_indices = @transform_0, window_bounds = array<i64: 1, 16, 128>}, {pipeline_mode = #tpu.pipeline_mode<synchronous>, transform_indices = @transform_1, window_bounds = array<i64: 128, 256>}, {pipeline_mode = #tpu.pipeline_mode<synchronous>, transform_indices = @transform_2, window_bounds = array<i64: 1, 256>}, {pipeline_mode = #tpu.pipeline_mode<synchronous>, transform_indices = @transform_3, window_bounds = array<i64: 9, 256>}, {pipeline_mode = #tpu.pipeline_mode<synchronous>, transform_indices = @transform_4, window_bounds = array<i64: 1, 1, 256>}, {pipeline_mode = #tpu.pipeline_mode<synchronous>, transform_indices = @transform_5, window_bounds = array<i64: 16, 4>}, {pipeline_mode = #tpu.pipeline_mode<synchronous>, transform_indices = @transform_6, window_bounds = array<i64: 1, 4>}, {pipeline_mode = #tpu.pipeline_mode<synchronous>, transform_indices = @transform_7, window_bounds = array<i64: 4, 16>}, {pipeline_mode = #tpu.pipeline_mode<synchronous>, transform_indices = @transform_8, window_bounds = array<i64: 1, 16>}, {pipeline_mode = #tpu.pipeline_mode<synchronous>, transform_indices = @transform_9, window_bounds = array<i64: 256, 128>}, {pipeline_mode = #tpu.pipeline_mode<synchronous>, transform_indices = @transform_10, window_bounds = array<i64: 1, 128>}, {transform_indices = @transform_11, window_bounds = array<i64: 1, 16, 128>}]} {
    %c0 = arith.constant 0 : index
    %c0_0 = arith.constant 0 : index
    %c0_1 = arith.constant 0 : index
    %0 = vector.load %arg1[%c0, %c0_0, %c0_1] : memref<1x16x128xf32, #tpu.memory_space<vmem>>, vector<1x16x128xf32>
    %1 = vector.shape_cast %0 : vector<1x16x128xf32> to vector<16x128xf32>
    %2 = arith.truncf %1 : vector<16x128xf32> to vector<16x128xbf16>
    %c0_2 = arith.constant 0 : index
    %c0_3 = arith.constant 0 : index
    %3 = vector.load %arg2[%c0_2, %c0_3] : memref<128x256xbf16, #tpu.memory_space<vmem>>, vector<128x256xbf16>
    %cst = arith.constant dense<0.000000e+00> : vector<16x256xf32>
    %4 = tpu.matmul %2, %3, %cst {dimension_numbers = #tpu.dot_dimension_numbers<[1], [0], [0], [1], [0, 0, 1, 1], [], []>} : vector<16x128xbf16>, vector<128x256xbf16>, vector<16x256xf32> -> vector<16x256xf32>
    %c0_4 = arith.constant 0 : index
    %c0_5 = arith.constant 0 : index
    %5 = vector.load %arg3[%c0_4, %c0_5] : memref<1x256xf32, #tpu.memory_space<vmem>>, vector<1x256xf32>
    %6 = vector.broadcast %5 : vector<1x256xf32> to vector<16x256xf32>
    %7 = arith.addf %4, %6 : vector<16x256xf32>
    %8 = arith.negf %7 : vector<16x256xf32>
    %9 = math.exp %8 : vector<16x256xf32>
    %cst_6 = arith.constant 1.000000e+00 : f32
    %10 = vector.broadcast %cst_6 : f32 to vector<16x256xf32>
    %11 = arith.addf %10, %9 : vector<16x256xf32>
    %12 = arith.divf %10, %11 : vector<16x256xf32>
    %13 = arith.mulf %7, %12 : vector<16x256xf32>
    %cst_7 = arith.constant 0.000000e+00 : f32
    %14 = vector.broadcast %cst_7 : f32 to vector<1x1x288xf32>
    %c0_8 = arith.constant 0 : index
    %c0_9 = arith.constant 0 : index
    %c0_10 = arith.constant 0 : index
    %15 = vector.load %arg13[%c0_8, %c0_9, %c0_10] : memref<1x18x288xf32, #tpu.memory_space<vmem>>, vector<1x1x288xf32>
    tpu.vector_store %arg13[%c0_8, %c0_9, %c0_10], %14 {strides = array<i32>} : memref<1x18x288xf32, #tpu.memory_space<vmem>>, vector<1x1x288xf32>,
    %cst_11 = arith.constant 0.000000e+00 : f32
    %16 = vector.broadcast %cst_11 : f32 to vector<1x1x288xf32>
    %c0_12 = arith.constant 0 : index
    %c17 = arith.constant 17 : index
    %c0_13 = arith.constant 0 : index
    %17 = vector.load %arg13[%c0_12, %c17, %c0_13] : memref<1x18x288xf32, #tpu.memory_space<vmem>>, vector<1x1x288xf32>
    tpu.vector_store %arg13[%c0_12, %c17, %c0_13], %16 {strides = array<i32>} : memref<1x18x288xf32, #tpu.memory_space<vmem>>, vector<1x1x288xf32>,
    %cst_14 = arith.constant 0.000000e+00 : f32
    %18 = vector.broadcast %cst_14 : f32 to vector<1x16x16xf32>
    %c0_15 = arith.constant 0 : index
    %c1 = arith.constant 1 : index
    %c0_16 = arith.constant 0 : index
    %19 = vector.load %arg13[%c0_15, %c1, %c0_16] : memref<1x18x288xf32, #tpu.memory_space<vmem>>, vector<1x16x16xf32>
    tpu.vector_store %arg13[%c0_15, %c1, %c0_16], %18 {strides = array<i32>} : memref<1x18x288xf32, #tpu.memory_space<vmem>>, vector<1x16x16xf32>,
    %cst_17 = arith.constant 0.000000e+00 : f32
    %20 = vector.broadcast %cst_17 : f32 to vector<1x16x16xf32>
    %c0_18 = arith.constant 0 : index
    %c1_19 = arith.constant 1 : index
    %c272 = arith.constant 272 : index
    %21 = vector.load %arg13[%c0_18, %c1_19, %c272] : memref<1x18x288xf32, #tpu.memory_space<vmem>>, vector<1x16x16xf32>
    tpu.vector_store %arg13[%c0_18, %c1_19, %c272], %20 {strides = array<i32>} : memref<1x18x288xf32, #tpu.memory_space<vmem>>, vector<1x16x16xf32>,
    %22 = vector.shape_cast %13 : vector<16x256xf32> to vector<1x16x256xf32>
    %c0_20 = arith.constant 0 : index
    %c1_21 = arith.constant 1 : index
    %c16 = arith.constant 16 : index
    %23 = vector.load %arg13[%c0_20, %c1_21, %c16] : memref<1x18x288xf32, #tpu.memory_space<vmem>>, vector<1x16x256xf32>
    tpu.vector_store %arg13[%c0_20, %c1_21, %c16], %22 {strides = array<i32>} : memref<1x18x288xf32, #tpu.memory_space<vmem>>, vector<1x16x256xf32>,
    %c0_22 = arith.constant 0 : index
    %c0_23 = arith.constant 0 : index
    %24 = vector.load %arg4[%c0_22, %c0_23] : memref<9x256xf32, #tpu.memory_space<vmem>>, vector<9x256xf32>
    %cst_24 = arith.constant 0.000000e+00 : f32
    %25 = vector.broadcast %cst_24 : f32 to vector<1x16x256xf32>
    %c0_25 = arith.constant 0 : index
    %c0_26 = arith.constant 0 : index
    %c0_27 = arith.constant 0 : index
    %26 = vector.load %arg13[%c0_25, %c0_26, %c0_27] : memref<1x18x288xf32, #tpu.memory_space<vmem>>, vector<1x16x256xf32>
    %27 = vector.extract_strided_slice %24 {offsets = [0, 0], sizes = [1, 256], strides = [1, 1]} : vector<9x256xf32> to vector<1x256xf32>
    %28 = vector.shape_cast %27 : vector<1x256xf32> to vector<256xf32>
    %29 = vector.shape_cast %28 : vector<256xf32> to vector<1x1x256xf32>
    %30 = vector.broadcast %29 : vector<1x1x256xf32> to vector<1x16x256xf32>
    %31 = arith.mulf %26, %30 : vector<1x16x256xf32>
    %32 = arith.addf %25, %31 : vector<1x16x256xf32>
    %c0_28 = arith.constant 0 : index
    %c0_29 = arith.constant 0 : index
    %c16_30 = arith.constant 16 : index
    %33 = vector.load %arg13[%c0_28, %c0_29, %c16_30] : memref<1x18x288xf32, #tpu.memory_space<vmem>>, vector<1x16x256xf32>
    %34 = vector.extract_strided_slice %24 {offsets = [1, 0], sizes = [1, 256], strides = [1, 1]} : vector<9x256xf32> to vector<1x256xf32>
    %35 = vector.shape_cast %34 : vector<1x256xf32> to vector<256xf32>
    %36 = vector.shape_cast %35 : vector<256xf32> to vector<1x1x256xf32>
    %37 = vector.broadcast %36 : vector<1x1x256xf32> to vector<1x16x256xf32>
    %38 = arith.mulf %33, %37 : vector<1x16x256xf32>
    %39 = arith.addf %32, %38 : vector<1x16x256xf32>
    %c0_31 = arith.constant 0 : index
    %c0_32 = arith.constant 0 : index
    %c32 = arith.constant 32 : index
    %40 = vector.load %arg13[%c0_31, %c0_32, %c32] : memref<1x18x288xf32, #tpu.memory_space<vmem>>, vector<1x16x256xf32>
    %41 = vector.extract_strided_slice %24 {offsets = [2, 0], sizes = [1, 256], strides = [1, 1]} : vector<9x256xf32> to vector<1x256xf32>
    %42 = vector.shape_cast %41 : vector<1x256xf32> to vector<256xf32>
    %43 = vector.shape_cast %42 : vector<256xf32> to vector<1x1x256xf32>
    %44 = vector.broadcast %43 : vector<1x1x256xf32> to vector<1x16x256xf32>
    %45 = arith.mulf %40, %44 : vector<1x16x256xf32>
    %46 = arith.addf %39, %45 : vector<1x16x256xf32>
    %c0_33 = arith.constant 0 : index
    %c1_34 = arith.constant 1 : index
    %c0_35 = arith.constant 0 : index
    %47 = vector.load %arg13[%c0_33, %c1_34, %c0_35] : memref<1x18x288xf32, #tpu.memory_space<vmem>>, vector<1x16x256xf32>
    %48 = vector.extract_strided_slice %24 {offsets = [3, 0], sizes = [1, 256], strides = [1, 1]} : vector<9x256xf32> to vector<1x256xf32>
    %49 = vector.shape_cast %48 : vector<1x256xf32> to vector<256xf32>
    %50 = vector.shape_cast %49 : vector<256xf32> to vector<1x1x256xf32>
    %51 = vector.broadcast %50 : vector<1x1x256xf32> to vector<1x16x256xf32>
    %52 = arith.mulf %47, %51 : vector<1x16x256xf32>
    %53 = arith.addf %46, %52 : vector<1x16x256xf32>
    %c0_36 = arith.constant 0 : index
    %c1_37 = arith.constant 1 : index
    %c16_38 = arith.constant 16 : index
    %54 = vector.load %arg13[%c0_36, %c1_37, %c16_38] : memref<1x18x288xf32, #tpu.memory_space<vmem>>, vector<1x16x256xf32>
    %55 = vector.extract_strided_slice %24 {offsets = [4, 0], sizes = [1, 256], strides = [1, 1]} : vector<9x256xf32> to vector<1x256xf32>
    %56 = vector.shape_cast %55 : vector<1x256xf32> to vector<256xf32>
    %57 = vector.shape_cast %56 : vector<256xf32> to vector<1x1x256xf32>
    %58 = vector.broadcast %57 : vector<1x1x256xf32> to vector<1x16x256xf32>
    %59 = arith.mulf %54, %58 : vector<1x16x256xf32>
    %60 = arith.addf %53, %59 : vector<1x16x256xf32>
    %c0_39 = arith.constant 0 : index
    %c1_40 = arith.constant 1 : index
    %c32_41 = arith.constant 32 : index
    %61 = vector.load %arg13[%c0_39, %c1_40, %c32_41] : memref<1x18x288xf32, #tpu.memory_space<vmem>>, vector<1x16x256xf32>
    %62 = vector.extract_strided_slice %24 {offsets = [5, 0], sizes = [1, 256], strides = [1, 1]} : vector<9x256xf32> to vector<1x256xf32>
    %63 = vector.shape_cast %62 : vector<1x256xf32> to vector<256xf32>
    %64 = vector.shape_cast %63 : vector<256xf32> to vector<1x1x256xf32>
    %65 = vector.broadcast %64 : vector<1x1x256xf32> to vector<1x16x256xf32>
    %66 = arith.mulf %61, %65 : vector<1x16x256xf32>
    %67 = arith.addf %60, %66 : vector<1x16x256xf32>
    %c0_42 = arith.constant 0 : index
    %c2 = arith.constant 2 : index
    %c0_43 = arith.constant 0 : index
    %68 = vector.load %arg13[%c0_42, %c2, %c0_43] : memref<1x18x288xf32, #tpu.memory_space<vmem>>, vector<1x16x256xf32>
    %69 = vector.extract_strided_slice %24 {offsets = [6, 0], sizes = [1, 256], strides = [1, 1]} : vector<9x256xf32> to vector<1x256xf32>
    %70 = vector.shape_cast %69 : vector<1x256xf32> to vector<256xf32>
    %71 = vector.shape_cast %70 : vector<256xf32> to vector<1x1x256xf32>
    %72 = vector.broadcast %71 : vector<1x1x256xf32> to vector<1x16x256xf32>
    %73 = arith.mulf %68, %72 : vector<1x16x256xf32>
    %74 = arith.addf %67, %73 : vector<1x16x256xf32>
    %c0_44 = arith.constant 0 : index
    %c2_45 = arith.constant 2 : index
    %c16_46 = arith.constant 16 : index
    %75 = vector.load %arg13[%c0_44, %c2_45, %c16_46] : memref<1x18x288xf32, #tpu.memory_space<vmem>>, vector<1x16x256xf32>
    %76 = vector.extract_strided_slice %24 {offsets = [7, 0], sizes = [1, 256], strides = [1, 1]} : vector<9x256xf32> to vector<1x256xf32>
    %77 = vector.shape_cast %76 : vector<1x256xf32> to vector<256xf32>
    %78 = vector.shape_cast %77 : vector<256xf32> to vector<1x1x256xf32>
    %79 = vector.broadcast %78 : vector<1x1x256xf32> to vector<1x16x256xf32>
    %80 = arith.mulf %75, %79 : vector<1x16x256xf32>
    %81 = arith.addf %74, %80 : vector<1x16x256xf32>
    %c0_47 = arith.constant 0 : index
    %c2_48 = arith.constant 2 : index
    %c32_49 = arith.constant 32 : index
    %82 = vector.load %arg13[%c0_47, %c2_48, %c32_49] : memref<1x18x288xf32, #tpu.memory_space<vmem>>, vector<1x16x256xf32>
    %83 = vector.extract_strided_slice %24 {offsets = [8, 0], sizes = [1, 256], strides = [1, 1]} : vector<9x256xf32> to vector<1x256xf32>
    %84 = vector.shape_cast %83 : vector<1x256xf32> to vector<256xf32>
    %85 = vector.shape_cast %84 : vector<256xf32> to vector<1x1x256xf32>
    %86 = vector.broadcast %85 : vector<1x1x256xf32> to vector<1x16x256xf32>
    %87 = arith.mulf %82, %86 : vector<1x16x256xf32>
    %88 = arith.addf %81, %87 : vector<1x16x256xf32>
    %c0_50 = arith.constant 0 : index
    %c0_51 = arith.constant 0 : index
    %c0_52 = arith.constant 0 : index
    %89 = vector.load %arg5[%c0_50, %c0_51, %c0_52] : memref<1x1x256xf32, #tpu.memory_space<vmem>>, vector<1x1x256xf32>
    %90 = vector.broadcast %89 : vector<1x1x256xf32> to vector<1x16x256xf32>
    %91 = arith.addf %88, %90 : vector<1x16x256xf32>
    %92 = arith.negf %91 : vector<1x16x256xf32>
    %93 = math.exp %92 : vector<1x16x256xf32>
    %cst_53 = arith.constant 1.000000e+00 : f32
    %94 = vector.broadcast %cst_53 : f32 to vector<1x16x256xf32>
    %95 = arith.addf %94, %93 : vector<1x16x256xf32>
    %96 = arith.divf %94, %95 : vector<1x16x256xf32>
    %97 = arith.mulf %91, %96 : vector<1x16x256xf32>
    %cst_54 = arith.constant dense<0.000000e+00> : vector<1x256xf32>
    %98 = vector.multi_reduction <add>, %97, %cst_54 [1] : vector<1x16x256xf32> to vector<1x256xf32>
    %99 = vector.shape_cast %98 : vector<1x256xf32> to vector<1x16x16xf32>
    %cst_55 = arith.constant dense<0.000000e+00> : vector<1x16xf32>
    %100 = vector.multi_reduction <add>, %99, %cst_55 [1] : vector<1x16x16xf32> to vector<1x16xf32>
    %cst_56 = arith.constant 3.906250e-03 : f32
    %101 = vector.broadcast %cst_56 : f32 to vector<1x16xf32>
    %102 = arith.mulf %100, %101 : vector<1x16xf32>
    %103 = vector.shape_cast %102 : vector<1x16xf32> to vector<1x16x1xf32>
    %c0_57 = arith.constant 0 : index
    %c0_58 = arith.constant 0 : index
    %104 = vector.load %arg6[%c0_57, %c0_58] : memref<16x4xf32, #tpu.memory_space<vmem>>, vector<16x4xf32>
    %105 = vector.shape_cast %104 : vector<16x4xf32> to vector<1x16x4xf32>
    %106 = vector.broadcast %103 : vector<1x16x1xf32> to vector<1x16x4xf32>
    %107 = arith.mulf %106, %105 : vector<1x16x4xf32>
    %cst_59 = arith.constant dense<0.000000e+00> : vector<1x4xf32>
    %108 = vector.multi_reduction <add>, %107, %cst_59 [1] : vector<1x16x4xf32> to vector<1x4xf32>
    %c0_60 = arith.constant 0 : index
    %c0_61 = arith.constant 0 : index
    %109 = vector.load %arg7[%c0_60, %c0_61] : memref<1x4xf32, #tpu.memory_space<vmem>>, vector<1x4xf32>
    %110 = arith.addf %108, %109 : vector<1x4xf32>
    %111 = arith.negf %110 : vector<1x4xf32>
    %112 = math.exp %111 : vector<1x4xf32>
    %cst_62 = arith.constant 1.000000e+00 : f32
    %113 = vector.broadcast %cst_62 : f32 to vector<1x4xf32>
    %114 = arith.addf %113, %112 : vector<1x4xf32>
    %115 = arith.divf %113, %114 : vector<1x4xf32>
    %116 = arith.mulf %110, %115 : vector<1x4xf32>
    %117 = vector.shape_cast %116 : vector<1x4xf32> to vector<1x4x1xf32>
    %c0_63 = arith.constant 0 : index
    %c0_64 = arith.constant 0 : index
    %118 = vector.load %arg8[%c0_63, %c0_64] : memref<4x16xf32, #tpu.memory_space<vmem>>, vector<4x16xf32>
    %119 = vector.shape_cast %118 : vector<4x16xf32> to vector<1x4x16xf32>
    %120 = vector.broadcast %117 : vector<1x4x1xf32> to vector<1x4x16xf32>
    %121 = arith.mulf %120, %119 : vector<1x4x16xf32>
    %cst_65 = arith.constant dense<0.000000e+00> : vector<1x16xf32>
    %122 = vector.multi_reduction <add>, %121, %cst_65 [1] : vector<1x4x16xf32> to vector<1x16xf32>
    %c0_66 = arith.constant 0 : index
    %c0_67 = arith.constant 0 : index
    %123 = vector.load %arg9[%c0_66, %c0_67] : memref<1x16xf32, #tpu.memory_space<vmem>>, vector<1x16xf32>
    %124 = arith.addf %122, %123 : vector<1x16xf32>
    %125 = arith.negf %124 : vector<1x16xf32>
    %126 = math.exp %125 : vector<1x16xf32>
    %cst_68 = arith.constant 1.000000e+00 : f32
    %127 = vector.broadcast %cst_68 : f32 to vector<1x16xf32>
    %128 = arith.addf %127, %126 : vector<1x16xf32>
    %129 = arith.divf %127, %128 : vector<1x16xf32>
    %130 = tpu.concatenate %129, %129, %129, %129, %129, %129, %129, %129, %129, %129, %129, %129, %129, %129, %129, %129 in 1 : vector<1x16xf32>, vector<1x16xf32>, vector<1x16xf32>, vector<1x16xf32>, vector<1x16xf32>, vector<1x16xf32>, vector<1x16xf32>, vector<1x16xf32>, vector<1x16xf32>, vector<1x16xf32>, vector<1x16xf32>, vector<1x16xf32>, vector<1x16xf32>, vector<1x16xf32>, vector<1x16xf32>, vector<1x16xf32> -> vector<1x256xf32>
    %131 = vector.shape_cast %130 : vector<1x256xf32> to vector<1x1x256xf32>
    %132 = vector.broadcast %131 : vector<1x1x256xf32> to vector<1x16x256xf32>
    %133 = arith.mulf %97, %132 : vector<1x16x256xf32>
    %134 = vector.shape_cast %133 : vector<1x16x256xf32> to vector<16x256xf32>
    %135 = arith.truncf %134 : vector<16x256xf32> to vector<16x256xbf16>
    %c0_69 = arith.constant 0 : index
    %c0_70 = arith.constant 0 : index
    %136 = vector.load %arg10[%c0_69, %c0_70] : memref<256x128xbf16, #tpu.memory_space<vmem>>, vector<256x128xbf16>
    %cst_71 = arith.constant dense<0.000000e+00> : vector<16x128xf32>
    %137 = tpu.matmul %135, %136, %cst_71 {dimension_numbers = #tpu.dot_dimension_numbers<[1], [0], [0], [1], [0, 0, 1, 1], [], []>} : vector<16x256xbf16>, vector<256x128xbf16>, vector<16x128xf32> -> vector<16x128xf32>
    %c0_72 = arith.constant 0 : index
    %c0_73 = arith.constant 0 : index
    %138 = vector.load %arg11[%c0_72, %c0_73] : memref<1x128xf32, #tpu.memory_space<vmem>>, vector<1x128xf32>
    %139 = vector.broadcast %138 : vector<1x128xf32> to vector<16x128xf32>
    %140 = arith.addf %137, %139 : vector<16x128xf32>
    %c0_74 = arith.constant 0 : index
    %c0_75 = arith.constant 0 : index
    %c0_76 = arith.constant 0 : index
    %141 = vector.load %arg1[%c0_74, %c0_75, %c0_76] : memref<1x16x128xf32, #tpu.memory_space<vmem>>, vector<1x16x128xf32>
    %142 = vector.shape_cast %141 : vector<1x16x128xf32> to vector<16x128xf32>
    %143 = arith.addf %140, %142 : vector<16x128xf32>
    %144 = vector.shape_cast %143 : vector<16x128xf32> to vector<1x16x128xf32>
    %c0_77 = arith.constant 0 : index
    %c0_78 = arith.constant 0 : index
    %c0_79 = arith.constant 0 : index
    %145 = vector.load %arg12[%c0_77, %c0_78, %c0_79] : memref<1x16x128xf32, #tpu.memory_space<vmem>>, vector<1x16x128xf32>
    tpu.vector_store %arg12[%c0_77, %c0_78, %c0_79], %144 {strides = array<i32>} : memref<1x16x128xf32, #tpu.memory_space<vmem>>, vector<1x16x128xf32>,
    return
  }
  func.func @transform_0(%arg0: i32) -> (i32, i32, i32) {
    %c0_i32 = arith.constant 0 : i32
    %c0_i32_0 = arith.constant 0 : i32
    %c0_i32_1 = arith.constant 0 : i32
    return %arg0, %c0_i32, %c0_i32_0 : i32, i32, i32
  }
  func.func @transform_1(%arg0: i32) -> (i32, i32) {
    %c0_i32 = arith.constant 0 : i32
    %c0_i32_0 = arith.constant 0 : i32
    %c0_i32_1 = arith.constant 0 : i32
    return %c0_i32, %c0_i32_0 : i32, i32
  }
  func.func @transform_2(%arg0: i32) -> (i32, i32) {
    %c0_i32 = arith.constant 0 : i32
    %c0_i32_0 = arith.constant 0 : i32
    %c0_i32_1 = arith.constant 0 : i32
    return %c0_i32, %c0_i32_0 : i32, i32
  }
  func.func @transform_3(%arg0: i32) -> (i32, i32) {
    %c0_i32 = arith.constant 0 : i32
    %c0_i32_0 = arith.constant 0 : i32
    %c0_i32_1 = arith.constant 0 : i32
    return %c0_i32, %c0_i32_0 : i32, i32
  }
  func.func @transform_4(%arg0: i32) -> (i32, i32, i32) {
    %c0_i32 = arith.constant 0 : i32
    %c0_i32_0 = arith.constant 0 : i32
    %c0_i32_1 = arith.constant 0 : i32
    %c0_i32_2 = arith.constant 0 : i32
    return %c0_i32, %c0_i32_0, %c0_i32_1 : i32, i32, i32
  }
  func.func @transform_5(%arg0: i32) -> (i32, i32) {
    %c0_i32 = arith.constant 0 : i32
    %c0_i32_0 = arith.constant 0 : i32
    %c0_i32_1 = arith.constant 0 : i32
    return %c0_i32, %c0_i32_0 : i32, i32
  }
  func.func @transform_6(%arg0: i32) -> (i32, i32) {
    %c0_i32 = arith.constant 0 : i32
    %c0_i32_0 = arith.constant 0 : i32
    %c0_i32_1 = arith.constant 0 : i32
    return %c0_i32, %c0_i32_0 : i32, i32
  }
  func.func @transform_7(%arg0: i32) -> (i32, i32) {
    %c0_i32 = arith.constant 0 : i32
    %c0_i32_0 = arith.constant 0 : i32
    %c0_i32_1 = arith.constant 0 : i32
    return %c0_i32, %c0_i32_0 : i32, i32
  }
  func.func @transform_8(%arg0: i32) -> (i32, i32) {
    %c0_i32 = arith.constant 0 : i32
    %c0_i32_0 = arith.constant 0 : i32
    %c0_i32_1 = arith.constant 0 : i32
    return %c0_i32, %c0_i32_0 : i32, i32
  }
  func.func @transform_9(%arg0: i32) -> (i32, i32) {
    %c0_i32 = arith.constant 0 : i32
    %c0_i32_0 = arith.constant 0 : i32
    %c0_i32_1 = arith.constant 0 : i32
    return %c0_i32, %c0_i32_0 : i32, i32
  }
  func.func @transform_10(%arg0: i32) -> (i32, i32) {
    %c0_i32 = arith.constant 0 : i32
    %c0_i32_0 = arith.constant 0 : i32
    %c0_i32_1 = arith.constant 0 : i32
    return %c0_i32, %c0_i32_0 : i32, i32
  }
  func.func @transform_11(%arg0: i32) -> (i32, i32, i32) {
    %c0_i32 = arith.constant 0 : i32
    %c0_i32_0 = arith.constant 0 : i32
    %c0_i32_1 = arith.constant 0 : i32
    return %arg0, %c0_i32, %c0_i32_0 : i32, i32, i32
  }
}

</mosaic_0001>

<bundles_post_ra>
// kernel: tile.34
= control target key start
LH: loop header
LB: loop body
LE: loop exit
PB: predicated region body
PF: predicated region fallthrough
CT: control target
= control target key end

     0   :  { %s28_s0 = inlined_call_operand.vmem [shape: f32[16], index: 0, kind: input, shape index: {}]   ;;  %s29_s1 = inlined_call_operand.vmem [shape: f32[16,16], index: 1, kind: output, shape index: {}]  }
   0x1   :  { %v4_v0 = vld [vmem:[%s28_s0] ss:$0 sm:$0xff] }
   0x2   :  { %5 = vst [vmem:[%s29_s1] sm:$0xff] %v4_v0 }
   0x3   :  { %8 = vst [vmem:[%s29_s1 + $0x8] sm:$0xff] %v4_v0 }

// kernel: tile.35
= control target key start
LH: loop header
LB: loop body
LE: loop exit
PB: predicated region body
PF: predicated region fallthrough
CT: control target
= control target key end

     0   :  { %s7_s6 = smov 3  ;;  %s21_s9 = smov 3  ;;  %vm4_vm0 = vcmask 130048   ;;  %vm11_vm1 = vcmask 1048448   ;;  %vm18_vm2 = vcmask 917248   ;;  %vm25_vm3 = vcmask 786048   ;;  %s129_s0 = inlined_call_operand.vmem [shape: f32[16,16], index: 0, kind: input, shape index: {}]   ;;  %s130_s1 = inlined_call_operand.vmem [shape: f32[1,256], index: 1, kind: output, shape index: {}]  }
   0x1   :  { %v67_v0 = vld [vmem:[%s129_s0 + $0x7] ss:$8 sm:%s7_s6]   ;;  %s82_s10 = smov 112   ;;  %v69_v1 = vld [vmem:[%s129_s0 + $0x5] ss:$8 sm:%s21_s9]   ;;  %s83_s13 = smov 80  }
   0x2   :  { %9 = vrot.lane.b32.xlu0 %v67_v0, %s82_s10  ;;  %23 = vrot.lane.b32.xlu1 %v69_v1, %s83_s13  ;;  %s14_s14 = smov 3  ;;  %s28_s15 = smov 3  ;;  %vm32_vm4 = vcmask 654848   ;;  %vm39_vm5 = vcmask 523648   ;;  %vm46_vm6 = vcmask 392448   ;;  %vm53_vm7 = vcmask 261248  }
   0x3   :  { %s35_s16 = smov 3  ;;  %v68_v3 = vld [vmem:[%s129_s0 + $0x6] ss:$8 sm:%s14_s14]   ;;  %s84_s21 = smov 48   ;;  %v70_v4 = vld [vmem:[%s129_s0 + $0x4] ss:$8 sm:%s28_s15]  }
   0x4   :  { %v71_v2 = vld [vmem:[%s129_s0 + $0x3] ss:$8 sm:%s35_s16]   ;;  %s42_s24 = smov 3  ;;  %s85_s25 = smov 96  }
   0x5   :  { %37 = vrot.lane.b32.xlu2 %v71_v2, %s84_s21  ;;  %s86_s26 = smov 64   ;;  %s49_s27 = smov 3  ;;  %v72_v5 = vld [vmem:[%s129_s0 + $0x2] ss:$8 sm:%s42_s24]  }
   0x6   :  { %v73_v6 = vld [vmem:[%s129_s0 + $0x1] ss:$8 sm:%s49_s27]   ;;  %s87_s3 = smov 32   ;;  %s88_s4 = smov 16  }
   0x7   :  { %s2_s5 = smov 3 }
   0x8   :  { %v3_v7 = vld [vmem:[%s129_s0] ss:$8 sm:%s2_s5]  }
   0x9   :  { %5 = vst.msk [vmem:[#allocation0] ss:$8 sm:$0x3] %vm4_vm0, %v3_v7  }
   0xa   :  { %16 = vrot.lane.b32.xlu0 %v68_v3, %s85_s25  ;;  %30 = vrot.lane.b32.xlu1 %v70_v4, %s86_s26 }
   0xd   :  { %44 = vrot.lane.b32.xlu2 %v72_v5, %s87_s3 }
  0x12   :  { %51 = vrot.lane.b32.xlu0 %v73_v6, %s88_s4 }
  0x5f   :  { %v38_v8 = vpop.permute.xlu2 %37  }
  0x67   :  { %v45_v9 = vpop.permute.xlu2 %44  }
  0x74   :  { %v10_v10 = vpop.permute.xlu0 %9   ;;  %v24_v11 = vpop.permute.xlu1 %23  }
  0x75   :  { %12 = vst.msk [vmem:[#allocation0] ss:$8 sm:$0x3] %vm11_vm1, %v10_v10  }
  0x7c   :  { %v17_v12 = vpop.permute.xlu0 %16   ;;  %v31_v13 = vpop.permute.xlu1 %30  }
  0x7d   :  { %19 = vst.msk [vmem:[#allocation0] ss:$8 sm:$0x3] %vm18_vm2, %v17_v12  }
  0x7e   :  { %26 = vst.msk [vmem:[#allocation0] ss:$8 sm:$0x3] %vm25_vm3, %v24_v11  }
  0x7f   :  { %33 = vst.msk [vmem:[#allocation0] ss:$8 sm:$0x3] %vm32_vm4, %v31_v13  }
  0x80   :  { %40 = vst.msk [vmem:[#allocation0] ss:$8 sm:$0x3] %vm39_vm5, %v38_v8  }
  0x81   :  { %47 = vst.msk [vmem:[#allocation0] ss:$8 sm:$0x3] %vm46_vm6, %v45_v9  }
  0x84   :  { %v52_v14 = vpop.permute.xlu0 %51  }
  0x85   :  { %54 = vst.msk [vmem:[#allocation0] ss:$8 sm:$0x3] %vm53_vm7, %v52_v14  }
  0x8c   :  { %v57_v15 = vld [vmem:[#allocation0] sm:$0x1]  ;;  %v62_v16 = vld [vmem:[#allocation0 + $0x8] sm:$0x1] }
  0x8d   :  { %60 = vst [vmem:[%s130_s1] sm:$0x1] %v57_v15 }
  0x8e   :  { %74 = vst [vmem:[%s130_s1 + $0x1] sm:$0x1] %v62_v16 }

// kernel: tile.43
= control target key start
LH: loop header
LB: loop body
LE: loop exit
PB: predicated region body
PF: predicated region fallthrough
CT: control target
= control target key end

     0   :  { %s7_s6 = smov 3  ;;  %s21_s9 = smov 3  ;;  %vm4_vm0 = vcmask 130048   ;;  %vm11_vm1 = vcmask 1048448   ;;  %vm18_vm2 = vcmask 917248   ;;  %vm25_vm3 = vcmask 786048   ;;  %s129_s0 = inlined_call_operand.vmem [shape: f32[16,16], index: 0, kind: input, shape index: {}]   ;;  %s130_s1 = inlined_call_operand.vmem [shape: f32[1,1,256], index: 1, kind: output, shape index: {}]  }
   0x1   :  { %v67_v0 = vld [vmem:[%s129_s0 + $0x7] ss:$8 sm:%s7_s6]   ;;  %s82_s10 = smov 112   ;;  %v69_v1 = vld [vmem:[%s129_s0 + $0x5] ss:$8 sm:%s21_s9]   ;;  %s83_s13 = smov 80  }
   0x2   :  { %9 = vrot.lane.b32.xlu0 %v67_v0, %s82_s10  ;;  %23 = vrot.lane.b32.xlu1 %v69_v1, %s83_s13  ;;  %s14_s14 = smov 3  ;;  %s28_s15 = smov 3  ;;  %vm32_vm4 = vcmask 654848   ;;  %vm39_vm5 = vcmask 523648   ;;  %vm46_vm6 = vcmask 392448   ;;  %vm53_vm7 = vcmask 261248  }
   0x3   :  { %s35_s16 = smov 3  ;;  %v68_v3 = vld [vmem:[%s129_s0 + $0x6] ss:$8 sm:%s14_s14]   ;;  %s84_s21 = smov 48   ;;  %v70_v4 = vld [vmem:[%s129_s0 + $0x4] ss:$8 sm:%s28_s15]  }
   0x4   :  { %v71_v2 = vld [vmem:[%s129_s0 + $0x3] ss:$8 sm:%s35_s16]   ;;  %s42_s24 = smov 3  ;;  %s85_s25 = smov 96  }
   0x5   :  { %37 = vrot.lane.b32.xlu2 %v71_v2, %s84_s21  ;;  %s86_s26 = smov 64   ;;  %s49_s27 = smov 3  ;;  %v72_v5 = vld [vmem:[%s129_s0 + $0x2] ss:$8 sm:%s42_s24]  }
   0x6   :  { %v73_v6 = vld [vmem:[%s129_s0 + $0x1] ss:$8 sm:%s49_s27]   ;;  %s87_s3 = smov 32   ;;  %s88_s4 = smov 16  }
   0x7   :  { %s2_s5 = smov 3 }
   0x8   :  { %v3_v7 = vld [vmem:[%s129_s0] ss:$8 sm:%s2_s5]  }
   0x9   :  { %5 = vst.msk [vmem:[#allocation0] ss:$8 sm:$0x3] %vm4_vm0, %v3_v7  }
   0xa   :  { %16 = vrot.lane.b32.xlu0 %v68_v3, %s85_s25  ;;  %30 = vrot.lane.b32.xlu1 %v70_v4, %s86_s26 }
   0xd   :  { %44 = vrot.lane.b32.xlu2 %v72_v5, %s87_s3 }
  0x12   :  { %51 = vrot.lane.b32.xlu0 %v73_v6, %s88_s4 }
  0x5f   :  { %v38_v8 = vpop.permute.xlu2 %37  }
  0x67   :  { %v45_v9 = vpop.permute.xlu2 %44  }
  0x74   :  { %v10_v10 = vpop.permute.xlu0 %9   ;;  %v24_v11 = vpop.permute.xlu1 %23  }
  0x75   :  { %12 = vst.msk [vmem:[#allocation0] ss:$8 sm:$0x3] %vm11_vm1, %v10_v10  }
  0x7c   :  { %v17_v12 = vpop.permute.xlu0 %16   ;;  %v31_v13 = vpop.permute.xlu1 %30  }
  0x7d   :  { %19 = vst.msk [vmem:[#allocation0] ss:$8 sm:$0x3] %vm18_vm2, %v17_v12  }
  0x7e   :  { %26 = vst.msk [vmem:[#allocation0] ss:$8 sm:$0x3] %vm25_vm3, %v24_v11  }
  0x7f   :  { %33 = vst.msk [vmem:[#allocation0] ss:$8 sm:$0x3] %vm32_vm4, %v31_v13  }
  0x80   :  { %40 = vst.msk [vmem:[#allocation0] ss:$8 sm:$0x3] %vm39_vm5, %v38_v8  }
  0x81   :  { %47 = vst.msk [vmem:[#allocation0] ss:$8 sm:$0x3] %vm46_vm6, %v45_v9  }
  0x84   :  { %v52_v14 = vpop.permute.xlu0 %51  }
  0x85   :  { %54 = vst.msk [vmem:[#allocation0] ss:$8 sm:$0x3] %vm53_vm7, %v52_v14  }
  0x8c   :  { %v57_v15 = vld [vmem:[#allocation0] sm:$0x1]  ;;  %v62_v16 = vld [vmem:[#allocation0 + $0x8] sm:$0x1] }
  0x8d   :  { %60 = vst [vmem:[%s130_s1] sm:$0x1] %v57_v15 }
  0x8e   :  { %74 = vst [vmem:[%s130_s1 + $0x1] sm:$0x1] %v62_v16 }

// kernel: tile.47
= control target key start
LH: loop header
LB: loop body
LE: loop exit
PB: predicated region body
PF: predicated region fallthrough
CT: control target
= control target key end

     0   :  { %s131_s10 = smov 120   ;;  %s132_s11 = smov 104   ;;  %vm3_vm0 = vcmask 64512   ;;  %vm9_vm1 = vcmask 1048512   ;;  %vm15_vm2 = vcmask 982912   ;;  %vm21_vm3 = vcmask 917312   ;;  %s207_s0 = inlined_call_operand.vmem [shape: f32[16,8], index: 0, kind: input, shape index: {}]   ;;  %s208_s1 = inlined_call_operand.vmem [shape: f32[1,128], index: 1, kind: output, shape index: {}]  }
   0x1   :  { %v101_v0 = vld [vmem:[%s207_s0 + $0xf] sm:$0x1]   ;;  %v103_v1 = vld [vmem:[%s207_s0 + $0xd] sm:$0x1]   ;;  %v105_v2 = vld [vmem:[%s207_s0 + $0xb] sm:$0x1]  }
   0x2   :  { %7 = vrot.lane.b32.xlu0 %v101_v0, %s131_s10  ;;  %19 = vrot.lane.b32.xlu1 %v103_v1, %s132_s11  ;;  %s133_s14 = smov 88   ;;  %v102_v3 = vld [vmem:[%s207_s0 + $0xe] sm:$0x1]   ;;  %v104_v4 = vld [vmem:[%s207_s0 + $0xc] sm:$0x1]   ;;  %s134_s19 = smov 112  }
   0x3   :  { %31 = vrot.lane.b32.xlu2 %v105_v2, %s133_s14  ;;  %s135_s20 = smov 96   ;;  %v106_v5 = vld [vmem:[%s207_s0 + $0xa] sm:$0x1]   ;;  %s136_s23 = smov 80   ;;  %v107_v6 = vld [vmem:[%s207_s0 + $0x9] sm:$0x1]  }
   0x4   :  { %v108_v7 = vld [vmem:[%s207_s0 + $0x8] sm:$0x1]   ;;  %s137_s28 = smov 72   ;;  %s138_s29 = smov 64   ;;  %v109_v8 = vld [vmem:[%s207_s0 + $0x7] sm:$0x1]  }
   0x5   :  { %s139_s3 = smov 56   ;;  %v110_v9 = vld [vmem:[%s207_s0 + $0x6] sm:$0x1]   ;;  %v111_v10 = vld [vmem:[%s207_s0 + $0x5] sm:$0x1]   ;;  %s140_s8 = smov 48  }
   0x6   :  { %s141_s9 = smov 40   ;;  %v112_v11 = vld [vmem:[%s207_s0 + $0x4] sm:$0x1]   ;;  %s142_s12 = smov 32   ;;  %v113_v12 = vld [vmem:[%s207_s0 + $0x3] sm:$0x1]  }
   0x7   :  { %v114_v13 = vld [vmem:[%s207_s0 + $0x2] sm:$0x1]   ;;  %s143_s17 = smov 24   ;;  %s144_s18 = smov 16   ;;  %v115_v14 = vld [vmem:[%s207_s0 + $0x1] sm:$0x1]  }
   0x8   :  { %s145_s21 = smov 8   ;;  %v2_v15 = vld [vmem:[%s207_s0] sm:$0x1]   ;;  %vm27_vm4 = vcmask 851712   ;;  %vm33_vm5 = vcmask 786112   ;;  %vm39_vm6 = vcmask 720512  }
   0x9   :  { %4 = vst.msk [vmem:[#allocation0] sm:$0x1] %vm3_vm0, %v2_v15   ;;  %vm45_vm7 = vcmask 654912   ;;  %vm51_vm8 = vcmask 589312   ;;  %vm57_vm9 = vcmask 523712   ;;  %vm63_vm10 = vcmask 458112  }
   0xa   :  { %13 = vrot.lane.b32.xlu0 %v102_v3, %s134_s19  ;;  %25 = vrot.lane.b32.xlu1 %v104_v4, %s135_s20  ;;  %vm69_vm11 = vcmask 392512   ;;  %vm75_vm12 = vcmask 326912   ;;  %vm81_vm13 = vcmask 261312   ;;  %vm87_vm14 = vcmask 195712  }
   0xb   :  { %37 = vrot.lane.b32.xlu2 %v106_v5, %s136_s23  ;;  %vm93_vm15 = vcmask 130112  }
  0x12   :  { %43 = vrot.lane.b32.xlu0 %v107_v6, %s137_s28  ;;  %49 = vrot.lane.b32.xlu1 %v108_v7, %s138_s29 }
  0x13   :  { %55 = vrot.lane.b32.xlu2 %v109_v8, %s139_s3 }
  0x1a   :  { %61 = vrot.lane.b32.xlu0 %v110_v9, %s140_s8  ;;  %67 = vrot.lane.b32.xlu1 %v111_v10, %s141_s9 }
  0x1b   :  { %73 = vrot.lane.b32.xlu2 %v112_v11, %s142_s12 }
  0x22   :  { %79 = vrot.lane.b32.xlu0 %v113_v12, %s143_s17  ;;  %85 = vrot.lane.b32.xlu1 %v114_v13, %s144_s18 }
  0x23   :  { %91 = vrot.lane.b32.xlu2 %v115_v14, %s145_s21 }
  0x5d   :  { %v32_v16 = vpop.permute.xlu2 %31  }
  0x65   :  { %v38_v17 = vpop.permute.xlu2 %37  }
  0x6d   :  { %v56_v18 = vpop.permute.xlu2 %55  }
  0x74   :  { %v8_v19 = vpop.permute.xlu0 %7   ;;  %v20_v20 = vpop.permute.xlu1 %19  }
  0x75   :  { %10 = vst.msk [vmem:[#allocation0] sm:$0x1] %vm9_vm1, %v8_v19   ;;  %v74_v21 = vpop.permute.xlu2 %73  }
  0x7c   :  { %v14_v22 = vpop.permute.xlu0 %13   ;;  %v26_v23 = vpop.permute.xlu1 %25  }
  0x7d   :  { %16 = vst.msk [vmem:[#allocation0] sm:$0x1] %vm15_vm2, %v14_v22   ;;  %v92_v24 = vpop.permute.xlu2 %91  }
  0x7e   :  { %22 = vst.msk [vmem:[#allocation0] sm:$0x1] %vm21_vm3, %v20_v20  }
  0x7f   :  { %28 = vst.msk [vmem:[#allocation0] sm:$0x1] %vm27_vm4, %v26_v23  }
  0x80   :  { %34 = vst.msk [vmem:[#allocation0] sm:$0x1] %vm33_vm5, %v32_v16  }
  0x81   :  { %40 = vst.msk [vmem:[#allocation0] sm:$0x1] %vm39_vm6, %v38_v17  }
  0x84   :  { %v44_v25 = vpop.permute.xlu0 %43   ;;  %v50_v26 = vpop.permute.xlu1 %49  }
  0x85   :  { %46 = vst.msk [vmem:[#allocation0] sm:$0x1] %vm45_vm7, %v44_v25  }
  0x86   :  { %52 = vst.msk [vmem:[#allocation0] sm:$0x1] %vm51_vm8, %v50_v26  }
  0x87   :  { %58 = vst.msk [vmem:[#allocation0] sm:$0x1] %vm57_vm9, %v56_v18  }
  0x8c   :  { %v62_v27 = vpop.permute.xlu0 %61   ;;  %v68_v28 = vpop.permute.xlu1 %67  }
  0x8d   :  { %64 = vst.msk [vmem:[#allocation0] sm:$0x1] %vm63_vm10, %v62_v27  }
  0x8e   :  { %70 = vst.msk [vmem:[#allocation0] sm:$0x1] %vm69_vm11, %v68_v28  }
  0x8f   :  { %76 = vst.msk [vmem:[#allocation0] sm:$0x1] %vm75_vm12, %v74_v21  }
  0x94   :  { %v80_v29 = vpop.permute.xlu0 %79   ;;  %v86_v30 = vpop.permute.xlu1 %85  }
  0x95   :  { %82 = vst.msk [vmem:[#allocation0] sm:$0x1] %vm81_vm13, %v80_v29  }
  0x96   :  { %88 = vst.msk [vmem:[#allocation0] sm:$0x1] %vm87_vm14, %v86_v30  }
  0x97   :  { %94 = vst.msk [vmem:[#allocation0] sm:$0x1] %vm93_vm15, %v92_v24  }
  0x9e   :  { %v97_v31 = vld [vmem:[#allocation0] sm:$0x1] }
  0x9f   :  { %100 = vst [vmem:[%s208_s1] sm:$0x1] %v97_v31 }

// kernel: tile.46
= control target key start
LH: loop header
LB: loop body
LE: loop exit
PB: predicated region body
PF: predicated region fallthrough
CT: control target
= control target key end

     0   :  { %s28_s0 = inlined_call_operand.vmem [shape: f32[8], index: 0, kind: input, shape index: {}]   ;;  %s29_s1 = inlined_call_operand.vmem [shape: f32[16,8], index: 1, kind: output, shape index: {}]  }
   0x1   :  { %v4_v0 = vld [vmem:[%s28_s0] ss:$0 sm:$0xff] }
   0x2   :  { %5 = vst [vmem:[%s29_s1] sm:$0xff] %v4_v0 }
   0x3   :  { %8 = vst [vmem:[%s29_s1 + $0x8] sm:$0xff] %v4_v0 }

// kernel: tile.39
= control target key start
LH: loop header
LB: loop body
LE: loop exit
PB: predicated region body
PF: predicated region fallthrough
CT: control target
= control target key end

     0   :  { %s81_s6 = smov 3  ;;  %s36_s9 = smov 3  ;;  %vm41_vm0 = vcmask 1043458   ;;  %vm46_vm1 = vcmask 1045508   ;;  %vm51_vm2 = vcmask 1047558   ;;  %vm4_vm3 = vcmask 1047556   ;;  %s878_s0 = inlined_call_operand.vmem [shape: f32[9,16,16], index: 0, kind: input, shape index: {}]   ;;  %s879_s1 = inlined_call_operand.vmem [shape: f32[9,256], index: 1, kind: output, shape index: {}]  }
   0x1   :  { %v426_v0 = vld [vmem:[%s878_s0 + $0x87] ss:$8 sm:%s81_s6]   ;;  %s39_s10 = smov 12  ;;  %s501_s11 = smov 112   ;;  %vm6_vm4 = vcmask 130048   ;;  %vm55_vm5 = vcmask 1048448  }
   0x2   :  { %83 = vrot.lane.b32.xlu1 %v426_v0, %s501_s11  ;;  %v417_v1 = vld [vmem:[%s878_s0 + $0x7] ss:$16 sm:%s36_s9]   ;;  %s44_s14 = smov 48  ;;  %s49_s15 = smov 192  ;;  %vm108_vm6 = vcmask 917248   ;;  %vm161_vm7 = vcmask 786048  }
   0x3   :  { %v418_v2 = vld [vmem:[%s878_s0 + $0x7] ss:$16 sm:%s39_s10]   ;;  %s89_s20 = smov 3  ;;  %s92_s21 = smov 12  ;;  %vm214_vm8 = vcmask 654848   ;;  %vm267_vm9 = vcmask 523648  }
   0x4   :  { %v419_v3 = vld [vmem:[%s878_s0 + $0x7] ss:$16 sm:%s44_s14]   ;;  %v42_v4 = vsel %vm41_vm0, %v418_v2, %v417_v1  ;;  %v428_v6 = vld [vmem:[%s878_s0 + $0x6] ss:$16 sm:%s89_s20]   ;;  %s97_s26 = smov 48  ;;  %s102_s27 = smov 192 }
   0x5   :  { %v420_v5 = vld [vmem:[%s878_s0 + $0x7] ss:$16 sm:%s49_s15]   ;;  %v47_v7 = vsel %vm46_vm1, %v419_v3, %v42_v4  ;;  %v429_v8 = vld [vmem:[%s878_s0 + $0x6] ss:$16 sm:%s92_s21]   ;;  %s58_s3 = smov 3  ;;  %s61_s8 = smov 12 }
   0x6   :  { %v430_v9 = vld [vmem:[%s878_s0 + $0x6] ss:$16 sm:%s97_s26]   ;;  %v52_v10 = vsel %vm51_vm2, %v420_v5, %v47_v7  ;;  %v95_v11 = vsel %vm41_vm0, %v429_v8, %v428_v6  ;;  %v421_v13 = vld [vmem:[%s878_s0 + $0xf] ss:$16 sm:%s58_s3]   ;;  %s66_s9 = smov 48  ;;  %s71_s13 = smov 192 }
   0x7   :  { %v431_v12 = vld [vmem:[%s878_s0 + $0x6] ss:$16 sm:%s102_s27]   ;;  %53 = vrot.lane.b32.xlu0 %v52_v10, %s501_s11  ;;  %v100_v14 = vsel %vm46_vm1, %v430_v9, %v95_v11  ;;  %s164_s18 = smov 3  ;;  %s167_s19 = smov 12  ;;  %vm320_vm10 = vcmask 392448   ;;  %vm373_vm11 = vcmask 261248  }
   0x8   :  { %v422_v15 = vld [vmem:[%s878_s0 + $0xf] ss:$16 sm:%s61_s8]   ;;  %v105_v16 = vsel %vm51_vm2, %v431_v12, %v100_v14  ;;  %v443_v21 = vld [vmem:[%s878_s0 + $0xd] ss:$16 sm:%s164_s18]   ;;  %s172_s24 = smov 48  ;;  %s177_s25 = smov 192 }
   0x9   :  { %v64_v17 = vsel %vm41_vm0, %v422_v15, %v421_v13  ;;  %v423_v18 = vld [vmem:[%s878_s0 + $0xf] ss:$16 sm:%s66_s9]   ;;  %v444_v22 = vld [vmem:[%s878_s0 + $0xd] ss:$16 sm:%s167_s19]   ;;  %s502_s26 = smov 96   ;;  %s142_s29 = smov 3 }
   0xa   :  { %v424_v19 = vld [vmem:[%s878_s0 + $0xf] ss:$16 sm:%s71_s13]   ;;  %v69_v20 = vsel %vm46_vm1, %v423_v18, %v64_v17  ;;  %106 = vrot.lane.b32.xlu1 %v105_v16, %s502_s26  ;;  %v170_v23 = vsel %vm41_vm0, %v444_v22, %v443_v21  ;;  %s145_s30 = smov 12  ;;  %s150_s4 = smov 48 }
   0xb   :  { %v445_v24 = vld [vmem:[%s878_s0 + $0xd] ss:$16 sm:%s172_s24]   ;;  %v439_v25 = vld [vmem:[%s878_s0 + $0x5] ss:$16 sm:%s142_s29]   ;;  %v74_v26 = vsel %vm51_vm2, %v424_v19, %v69_v20  ;;  %s111_s9 = smov 3  ;;  %s114_s10 = smov 12 }
   0xc   :  { %v175_v27 = vsel %vm46_vm1, %v445_v24, %v170_v23  ;;  %v446_v28 = vld [vmem:[%s878_s0 + $0xd] ss:$16 sm:%s177_s25]   ;;  %v440_v29 = vld [vmem:[%s878_s0 + $0x5] ss:$16 sm:%s145_s30]   ;;  %s119_s16 = smov 48  ;;  %s124_s17 = smov 192 }
   0xd   :  { %v441_v30 = vld [vmem:[%s878_s0 + $0x5] ss:$16 sm:%s150_s4]   ;;  %v432_v31 = vld [vmem:[%s878_s0 + $0xe] ss:$16 sm:%s111_s9]   ;;  %v148_v32 = vsel %vm41_vm0, %v440_v29, %v439_v25  ;;  %s155_s18 = smov 192  ;;  %s217_s23 = smov 3  ;;  %v180_v35 = vsel %vm51_vm2, %v446_v28, %v175_v27 }
   0xe   :  { %v433_v33 = vld [vmem:[%s878_s0 + $0xe] ss:$16 sm:%s114_s10]   ;;  %s220_s25 = smov 12  ;;  %s225_s27 = smov 48  ;;  %v454_v39 = vld [vmem:[%s878_s0 + $0xc] ss:$16 sm:%s217_s23]   ;;  %v153_v41 = vsel %vm46_vm1, %v441_v30, %v148_v32 }
   0xf   :  { %v434_v34 = vld [vmem:[%s878_s0 + $0xe] ss:$16 sm:%s119_s16]   ;;  %75 = vrot.lane.b32.xlu0 %v74_v26, %s501_s11  ;;  %v117_v36 = vsel %vm41_vm0, %v433_v33, %v432_v31  ;;  %s195_s3 = smov 3  ;;  %s230_s8 = smov 192 }
  0x10   :  { %v435_v37 = vld [vmem:[%s878_s0 + $0xe] ss:$16 sm:%s124_s17]   ;;  %v122_v38 = vsel %vm46_vm1, %v434_v34, %v117_v36  ;;  %v455_v40 = vld [vmem:[%s878_s0 + $0xc] ss:$16 sm:%s220_s25]   ;;  %s198_s9 = smov 12  ;;  %s503_s10 = smov 80  }
  0x11   :  { %v442_v42 = vld [vmem:[%s878_s0 + $0x5] ss:$16 sm:%s155_s18]   ;;  %v127_v43 = vsel %vm51_vm2, %v435_v37, %v122_v38  ;;  %v223_v44 = vsel %vm41_vm0, %v455_v40, %v454_v39  ;;  %v456_v45 = vld [vmem:[%s878_s0 + $0xc] ss:$16 sm:%s225_s27]   ;;  %s203_s12 = smov 48  ;;  %s270_s17 = smov 3 }
  0x12   :  { %181 = vrot.lane.b32.xlu1 %v180_v35, %s503_s10  ;;  %128 = vrot.lane.b32.xlu2 %v127_v43, %s502_s26  ;;  %v450_v46 = vld [vmem:[%s878_s0 + $0x4] ss:$16 sm:%s195_s3]   ;;  %v158_v48 = vsel %vm51_vm2, %v442_v42, %v153_v41  ;;  %v228_v49 = vsel %vm46_vm1, %v456_v45, %v223_v44  ;;  %s134_s20 = smov 3  ;;  %s273_s21 = smov 12 }
  0x13   :  { %v451_v47 = vld [vmem:[%s878_s0 + $0x4] ss:$16 sm:%s198_s9]   ;;  %v457_v50 = vld [vmem:[%s878_s0 + $0xc] ss:$16 sm:%s230_s8]   ;;  %s208_s11 = smov 192  ;;  %s278_s29 = smov 48 }
  0x14   :  { %v452_v51 = vld [vmem:[%s878_s0 + $0x4] ss:$16 sm:%s203_s12]   ;;  %v201_v52 = vsel %vm41_vm0, %v451_v47, %v450_v46  ;;  %v465_v53 = vld [vmem:[%s878_s0 + $0xb] ss:$16 sm:%s270_s17]   ;;  %v233_v55 = vsel %vm51_vm2, %v457_v50, %v228_v49  ;;  %s248_s3 = smov 3  ;;  %s251_s4 = smov 12 }
  0x15   :  { %v466_v54 = vld [vmem:[%s878_s0 + $0xb] ss:$16 sm:%s273_s21]   ;;  %v437_v56 = vld [vmem:[%s878_s0 + $0x86] ss:$8 sm:%s134_s20]   ;;  %v206_v57 = vsel %vm46_vm1, %v452_v51, %v201_v52  ;;  %s283_s9 = smov 192  ;;  %s504_s12 = smov 64  }
  0x16   :  { %v453_v58 = vld [vmem:[%s878_s0 + $0x4] ss:$16 sm:%s208_s11]   ;;  %v276_v59 = vsel %vm41_vm0, %v466_v54, %v465_v53  ;;  %v467_v60 = vld [vmem:[%s878_s0 + $0xb] ss:$16 sm:%s278_s29]   ;;  %s323_s17 = smov 3  ;;  %s326_s18 = smov 12 }
  0x17   :  { %159 = vrot.lane.b32.xlu0 %v158_v48, %s503_s10  ;;  %v461_v61 = vld [vmem:[%s878_s0 + $0x3] ss:$16 sm:%s248_s3]   ;;  %v211_v63 = vsel %vm51_vm2, %v453_v58, %v206_v57  ;;  %v281_v0 = vsel %vm46_vm1, %v467_v60, %v276_v59  ;;  %s187_s21 = smov 3  ;;  %s261_s11 = smov 192 }
  0x18   :  { %v462_v62 = vld [vmem:[%s878_s0 + $0x3] ss:$16 sm:%s251_s4]   ;;  %v468_v1 = vld [vmem:[%s878_s0 + $0xb] ss:$16 sm:%s283_s9]   ;;  %s331_s29 = smov 48  ;;  %s301_s3 = smov 3 }
  0x19   :  { %v254_v3 = vsel %vm41_vm0, %v462_v62, %v461_v61  ;;  %v476_v4 = vld [vmem:[%s878_s0 + $0xa] ss:$16 sm:%s323_s17]   ;;  %v286_v6 = vsel %vm51_vm2, %v468_v1, %v281_v0  ;;  %v448_v7 = vld [vmem:[%s878_s0 + $0x85] ss:$8 sm:%s187_s21]   ;;  %s304_s4 = smov 12  ;;  %s336_s9 = smov 192 }
  0x1a   :  { %234 = vrot.lane.b32.xlu1 %v233_v55, %s504_s12  ;;  %136 = vrot.lane.b32.xlu2 %v437_v56, %s502_s26  ;;  %s256_s26 = smov 48  ;;  %v477_v5 = vld [vmem:[%s878_s0 + $0xa] ss:$16 sm:%s326_s18]   ;;  %s376_s17 = smov 3 }
  0x1b   :  { %v463_v2 = vld [vmem:[%s878_s0 + $0x3] ss:$16 sm:%s256_s26]   ;;  %v329_v10 = vsel %vm41_vm0, %v477_v5, %v476_v4  ;;  %v478_v11 = vld [vmem:[%s878_s0 + $0xa] ss:$16 sm:%s331_s29]   ;;  %s505_s26 = smov 48   ;;  %s379_s18 = smov 12 }
  0x1c   :  { %v259_v8 = vsel %vm46_vm1, %v463_v2, %v254_v3  ;;  %v464_v9 = vld [vmem:[%s878_s0 + $0x3] ss:$16 sm:%s261_s11]   ;;  %v472_v12 = vld [vmem:[%s878_s0 + $0x2] ss:$16 sm:%s301_s3]   ;;  %v334_v15 = vsel %vm46_vm1, %v478_v11, %v329_v10  ;;  %s240_s21 = smov 3  ;;  %s314_s11 = smov 192 }
  0x1d   :  { %v473_v13 = vld [vmem:[%s878_s0 + $0x2] ss:$16 sm:%s304_s4]   ;;  %v264_v14 = vsel %vm51_vm2, %v464_v9, %v259_v8  ;;  %v479_v16 = vld [vmem:[%s878_s0 + $0xa] ss:$16 sm:%s336_s9]   ;;  %s384_s29 = smov 48  ;;  %s354_s3 = smov 3 }
  0x1e   :  { %v307_v18 = vsel %vm41_vm0, %v473_v13, %v472_v12  ;;  %v487_v19 = vld [vmem:[%s878_s0 + $0x9] ss:$16 sm:%s376_s17]   ;;  %v339_v21 = vsel %vm51_vm2, %v479_v16, %v334_v15  ;;  %v459_v22 = vld [vmem:[%s878_s0 + $0x84] ss:$8 sm:%s240_s21]   ;;  %s357_s4 = smov 12  ;;  %s389_s9 = smov 192 }
  0x1f   :  { %212 = vrot.lane.b32.xlu0 %v211_v63, %s504_s12  ;;  %v488_v20 = vld [vmem:[%s878_s0 + $0x9] ss:$16 sm:%s379_s18]   ;;  %s362_s16 = smov 48  ;;  %s293_s19 = smov 3 }
  0x20   :  { %v475_v24 = vld [vmem:[%s878_s0 + $0x2] ss:$16 sm:%s314_s11]   ;;  %v382_v25 = vsel %vm41_vm0, %v488_v20, %v487_v19  ;;  %v489_v26 = vld [vmem:[%s878_s0 + $0x9] ss:$16 sm:%s384_s29]   ;;  %s367_s22 = smov 192  ;;  %s507_s27 = smov 16  }
  0x21   :  { %v483_v27 = vld [vmem:[%s878_s0 + $0x1] ss:$16 sm:%s354_s3]   ;;  %v387_v30 = vsel %vm46_vm1, %v489_v26, %v382_v25  ;;  %v490_v31 = vld [vmem:[%s878_s0 + $0x9] ss:$16 sm:%s389_s9]   ;;  %s399_s30 = smov 3  ;;  %s30_s21 = smov 3 }
  0x22   :  { %287 = vrot.lane.b32.xlu1 %v286_v6, %s505_s26  ;;  %189 = vrot.lane.b32.xlu2 %v448_v7, %s503_s10  ;;  %s309_s10 = smov 48  ;;  %v484_v28 = vld [vmem:[%s878_s0 + $0x1] ss:$16 sm:%s357_s4]   ;;  %v392_v34 = vsel %vm51_vm2, %v490_v31, %v387_v30 }
  0x23   :  { %v474_v17 = vld [vmem:[%s878_s0 + $0x2] ss:$16 sm:%s309_s10]   ;;  %s506_s10 = smov 32   ;;  %v360_v32 = vsel %vm41_vm0, %v484_v28, %v483_v27  ;;  %v485_v33 = vld [vmem:[%s878_s0 + $0x1] ss:$16 sm:%s362_s16]  }
  0x24   :  { %v312_v23 = vsel %vm46_vm1, %v474_v17, %v307_v18  ;;  %v470_v35 = vld [vmem:[%s878_s0 + $0x83] ss:$8 sm:%s293_s19]   ;;  %v365_v36 = vsel %vm46_vm1, %v485_v33, %v360_v32  ;;  %v486_v37 = vld [vmem:[%s878_s0 + $0x1] ss:$16 sm:%s367_s22]  }
  0x25   :  { %v317_v29 = vsel %vm51_vm2, %v475_v24, %v312_v23  ;;  %v370_v38 = vsel %vm51_vm2, %v486_v37, %v365_v36  ;;  %v492_v40 = vld [vmem:[%s878_s0 + $0x81] ss:$8 sm:%s399_s30]   ;;  %v2_v41 = vld [vmem:[%s878_s0] ss:$8 sm:$0xf]  }
  0x26   :  { %v3_v42 = vld [vmem:[%s878_s0] ss:$8 sm:$0xf0]  }
  0x27   :  { %265 = vrot.lane.b32.xlu0 %v264_v14, %s505_s26  ;;  %v5_v43 = vsel %vm4_vm3, %v3_v42, %v2_v41  ;;  %v409_v44 = vld [vmem:[%s878_s0 + $0x40] ss:$8 sm:$0xf]  }
  0x28   :  { %v410_v45 = vld [vmem:[%s878_s0 + $0x40] ss:$8 sm:$0xf0]   ;;  %7 = vst.msk [vmem:[%s879_s1] ss:$8 sm:$0x3] %vm6_vm4, %v5_v43  }
  0x29   :  { %406 = vst.msk [vmem:[%s879_s1 - $0xf] ss:$8 sm:$0xc] %vm6_vm4, %v5_v43   ;;  %v19_v46 = vsel %vm4_vm3, %v410_v45, %v409_v44  ;;  %v415_v47 = vld [vmem:[%s878_s0 + $0x80] ss:$8 sm:%s30_s21]  }
  0x2a   :  { %340 = vrot.lane.b32.xlu1 %v339_v21, %s506_s10  ;;  %242 = vrot.lane.b32.xlu2 %v459_v22, %s504_s12  ;;  %407 = vst.msk [vmem:[%s879_s1 - $0x1e] ss:$8 sm:$0x30] %vm6_vm4, %v5_v43  }
  0x2b   :  { %408 = vst.msk [vmem:[%s879_s1 - $0x2d] ss:$8 sm:$0xc0] %vm6_vm4, %v5_v43  }
  0x2c   :  { %411 = vst.msk [vmem:[%s879_s1 + $0x4] ss:$8 sm:$0x3] %vm6_vm4, %v19_v46  }
  0x2d   :  { %412 = vst.msk [vmem:[%s879_s1 - $0xb] ss:$8 sm:$0xc] %vm6_vm4, %v19_v46  }
  0x2e   :  { %413 = vst.msk [vmem:[%s879_s1 - $0x1a] ss:$8 sm:$0x30] %vm6_vm4, %v19_v46  }
  0x2f   :  { %318 = vrot.lane.b32.xlu0 %v317_v29, %s506_s10  ;;  %414 = vst.msk [vmem:[%s879_s1 - $0x29] ss:$8 sm:$0xc0] %vm6_vm4, %v19_v46  }
  0x30   :  { %416 = vst.msk [vmem:[%s879_s1 + $0x10] ss:$8 sm:$0x3] %vm6_vm4, %v415_v47  }
  0x32   :  { %393 = vrot.lane.b32.xlu1 %v392_v34, %s507_s27  ;;  %295 = vrot.lane.b32.xlu2 %v470_v35, %s505_s26  ;;  %s346_s26 = smov 3 }
  0x33   :  { %v481_v39 = vld [vmem:[%s878_s0 + $0x82] ss:$8 sm:%s346_s26]  }
  0x37   :  { %371 = vrot.lane.b32.xlu0 %v370_v38, %s507_s27 }
  0x3a   :  { %348 = vrot.lane.b32.xlu2 %v481_v39, %s506_s10 }
  0x42   :  { %401 = vrot.lane.b32.xlu2 %v492_v40, %s507_s27 }
  0x6c   :  { %v129_v48 = vpop.permute.xlu2 %128  }
  0x74   :  { %v84_v49 = vpop.permute.xlu1 %83   ;;  %v137_v50 = vpop.permute.xlu2 %136  }
  0x75   :  { %427 = vst.msk [vmem:[%s879_s1 + $0x10] ss:$8 sm:$0x3] %vm55_vm5, %v84_v49  }
  0x76   :  { %438 = vst.msk [vmem:[%s879_s1 + $0x10] ss:$8 sm:$0x3] %vm108_vm6, %v137_v50  }
  0x79   :  { %v54_v51 = vpop.permute.xlu0 %53  }
  0x7a   :  { %56 = vst.msk [vmem:[%s879_s1] sm:$0xff] %vm55_vm5, %v54_v51  }
  0x7c   :  { %v107_v52 = vpop.permute.xlu1 %106   ;;  %v190_v53 = vpop.permute.xlu2 %189  }
  0x7d   :  { %109 = vst.msk [vmem:[%s879_s1] sm:$0xff] %vm108_vm6, %v107_v52  }
  0x7e   :  { %449 = vst.msk [vmem:[%s879_s1 + $0x10] ss:$8 sm:$0x3] %vm161_vm7, %v190_v53  }
  0x81   :  { %v76_v54 = vpop.permute.xlu0 %75  }
  0x82   :  { %425 = vst.msk [vmem:[%s879_s1 + $0x8] sm:$0xff] %vm55_vm5, %v76_v54  }
  0x83   :  { %436 = vst.msk [vmem:[%s879_s1 + $0x8] sm:$0xff] %vm108_vm6, %v129_v48  }
  0x84   :  { %v182_v55 = vpop.permute.xlu1 %181   ;;  %v243_v56 = vpop.permute.xlu2 %242  }
  0x85   :  { %447 = vst.msk [vmem:[%s879_s1 + $0x8] sm:$0xff] %vm161_vm7, %v182_v55  }
  0x86   :  { %460 = vst.msk [vmem:[%s879_s1 + $0x10] ss:$8 sm:$0x3] %vm214_vm8, %v243_v56  }
  0x89   :  { %v160_v57 = vpop.permute.xlu0 %159  }
  0x8a   :  { %162 = vst.msk [vmem:[%s879_s1] sm:$0xff] %vm161_vm7, %v160_v57  }
  0x8c   :  { %v235_v58 = vpop.permute.xlu1 %234   ;;  %v296_v59 = vpop.permute.xlu2 %295  }
  0x8d   :  { %458 = vst.msk [vmem:[%s879_s1 + $0x8] sm:$0xff] %vm214_vm8, %v235_v58  }
  0x8e   :  { %471 = vst.msk [vmem:[%s879_s1 + $0x10] ss:$8 sm:$0x3] %vm267_vm9, %v296_v59  }
  0x91   :  { %v213_v60 = vpop.permute.xlu0 %212  }
  0x92   :  { %215 = vst.msk [vmem:[%s879_s1] sm:$0xff] %vm214_vm8, %v213_v60  }
  0x94   :  { %v288_v61 = vpop.permute.xlu1 %287   ;;  %v349_v62 = vpop.permute.xlu2 %348  }
  0x95   :  { %469 = vst.msk [vmem:[%s879_s1 + $0x8] sm:$0xff] %vm267_vm9, %v288_v61  }
  0x96   :  { %482 = vst.msk [vmem:[%s879_s1 + $0x10] ss:$8 sm:$0x3] %vm320_vm10, %v349_v62  }
  0x99   :  { %v266_v63 = vpop.permute.xlu0 %265  }
  0x9a   :  { %268 = vst.msk [vmem:[%s879_s1] sm:$0xff] %vm267_vm9, %v266_v63  }
  0x9c   :  { %v341_v0 = vpop.permute.xlu1 %340   ;;  %v402_v1 = vpop.permute.xlu2 %401  }
  0x9d   :  { %480 = vst.msk [vmem:[%s879_s1 + $0x8] sm:$0xff] %vm320_vm10, %v341_v0  }
  0x9e   :  { %493 = vst.msk [vmem:[%s879_s1 + $0x10] ss:$8 sm:$0x3] %vm373_vm11, %v402_v1  }
  0xa1   :  { %v319_v2 = vpop.permute.xlu0 %318  }
  0xa2   :  { %321 = vst.msk [vmem:[%s879_s1] sm:$0xff] %vm320_vm10, %v319_v2  }
  0xa4   :  { %v394_v3 = vpop.permute.xlu1 %393  }
  0xa5   :  { %491 = vst.msk [vmem:[%s879_s1 + $0x8] sm:$0xff] %vm373_vm11, %v394_v3  }
  0xa9   :  { %v372_v4 = vpop.permute.xlu0 %371  }
  0xaa   :  { %374 = vst.msk [vmem:[%s879_s1] sm:$0xff] %vm373_vm11, %v372_v4  }

// kernel: _lambda_.2
= control target key start
LH: loop header
LB: loop body
LE: loop exit
PB: predicated region body
PF: predicated region fallthrough
CT: control target
= control target key end

     0   :  { %s2048_s17 = smov 0   ;;  %s2711_s0 = inlined_call_operand.vmem [shape: f32[2,16,128], index: 0, kind: input, shape index: {}]   ;;  %s2712_s1 = inlined_call_operand.vmem [shape: bf16[128,256], index: 1, kind: input, shape index: {}]   ;;  %s2713_s2 = inlined_call_operand.vmem [shape: f32[1,256], index: 2, kind: input, shape index: {}]   ;;  %s2714_s3 = inlined_call_operand.vmem [shape: f32[9,256], index: 3, kind: input, shape index: {}]   ;;  %s2715_s4 = inlined_call_operand.vmem [shape: f32[1,1,256], index: 4, kind: input, shape index: {}]   ;;  %s2716_s5 = inlined_call_operand.vmem [shape: f32[16,4], index: 5, kind: input, shape index: {}]   ;;  %s2717_s6 = inlined_call_operand.vmem [shape: f32[1,4], index: 6, kind: input, shape index: {}]   ;;  %s2718_s7 = inlined_call_operand.vmem [shape: f32[4,16], index: 7, kind: input, shape index: {}]   ;;  %s2719_s8 = inlined_call_operand.vmem [shape: f32[1,16], index: 8, kind: input, shape index: {}]   ;;  %s2720_s9 = inlined_call_operand.vmem [shape: bf16[256,128], index: 9, kind: input, shape index: {}]   ;;  %s2721_s10 = inlined_call_operand.vmem [shape: f32[1,128], index: 10, kind: input, shape index: {}]   ;;  %s2722_s11 = inlined_call_operand.vmem [shape: f32[2,16,128], index: 11, kind: output, shape index: {}]  }
   0x1 LB: > { %s1722_s18 = sadd.s32 4294967295, %s1976_s17   ;;  %p1726_p0 = scmp.ge.s32.totalorder %s1976_s17, 1  ;;  %s1976_s17 = sphi %s2048_s17, %s21_s17  }
   0x2   : > { %p337_p1 = scmp.lt.s32.totalorder %s1976_s17, 3 }
   0x4   : > { %p338_p2 = pnand %p1726_p0, %p337_p1 }
   0x5   : > { %p377_p3 = scmp.lt.s32.totalorder (!%p338_p2), %s1722_s18, 1  ;;  %s1978_s23 = smov (!%p338_p2), 16  }
   0x6   : > { %341 = sbr.rel (%p338_p2) target bundleno = 1372 (0x55c), region = 64  ;;  %s1979_s25 = smov (!%p338_p2), 32  }
   0x7   : > { %s1981_s14 = smov (!%p338_p2), 112   ;;  %s1982_s15 = smov (!%p338_p2), 96  }
   0x8   : > { %s1983_s20 = smov (!%p338_p2), 80   ;;  %s1984_s21 = smov (!%p338_p2), 48  }
   0x9   : > { %s1985_s22 = smov (!%p338_p2), 64  }
   0xb   : > { %v1789_v0 = vld [vmem:[%s2712_s1 + $0x70] sm:$0xf]  ;;  %v1888_v1 = vld [vmem:[%s2712_s1 + $0x74] sm:$0xf0]  ;;  %v1887_v2 = vld [vmem:[%s2712_s1 + $0x74] sm:$0xf] }
   0xc   : > { %v1790_v3 = vor.u32 %v1888_v1, %v1789_v0  ;;  %v1791_v4 = vld [vmem:[%s2712_s1 + $0x78] sm:$0xf0]  ;;  %v1781_v5 = vld [vmem:[%s2712_s1 + $0x60] sm:$0xf]  ;;  %v1886_v6 = vld [vmem:[%s2712_s1 + $0x64] sm:$0xf0] }
   0xd   : > { %v1794_v7 = vor.u32 %v1887_v2, %v1791_v4  ;;  %v1885_v8 = vld [vmem:[%s2712_s1 + $0x64] sm:$0xf]  ;;  %v1783_v9 = vld [vmem:[%s2712_s1 + $0x68] sm:$0xf0]  ;;  %v1782_v10 = vor.u32 %v1886_v6, %v1781_v5  ;;  %v1773_v12 = vld [vmem:[%s2712_s1 + $0x50] sm:$0xf] }
   0xe   : > { %492 = vmatpush.bf16.msra.mxu0 %v1790_v3  ;;  %v1786_v11 = vor.u32 %v1885_v8, %v1783_v9  ;;  %v1884_v13 = vld [vmem:[%s2712_s1 + $0x54] sm:$0xf0]  ;;  %v1883_v14 = vld [vmem:[%s2712_s1 + $0x54] sm:$0xf]  ;;  %v1775_v15 = vld [vmem:[%s2712_s1 + $0x58] sm:$0xf0] }
   0xf   : > { %506 = vmatpush.bf16.msra.mxu1 %v1794_v7  ;;  %v1774_v16 = vor.u32 %v1884_v13, %v1773_v12  ;;  %v1778_v17 = vor.u32 %v1883_v14, %v1775_v15  ;;  %v1765_v18 = vld [vmem:[%s2712_s1 + $0x40] sm:$0xf]  ;;  %v1882_v19 = vld [vmem:[%s2712_s1 + $0x44] sm:$0xf0]  ;;  %v1881_v20 = vld [vmem:[%s2712_s1 + $0x44] sm:$0xf] }
  0x10   : > { %v1767_v21 = vld [vmem:[%s2712_s1 + $0x48] sm:$0xf0]  ;;  %v1766_v22 = vor.u32 %v1882_v19, %v1765_v18  ;;  %v1757_v24 = vld [vmem:[%s2712_s1 + $0x30] sm:$0xf]  ;;  %v1880_v25 = vld [vmem:[%s2712_s1 + $0x34] sm:$0xf0] }
  0x11   : > { %v1770_v23 = vor.u32 %v1881_v20, %v1767_v21  ;;  %v1879_v26 = vld [vmem:[%s2712_s1 + $0x34] sm:$0xf]  ;;  %v1759_v27 = vld [vmem:[%s2712_s1 + $0x38] sm:$0xf0]  ;;  %v1758_v28 = vor.u32 %v1880_v25, %v1757_v24  ;;  %v1749_v30 = vld [vmem:[%s2712_s1 + $0x20] sm:$0xf] }
  0x12   : > { %493 = vmatpush.bf16.msra.mxu0 %v1782_v10  ;;  %v1762_v29 = vor.u32 %v1879_v26, %v1759_v27  ;;  %v1878_v31 = vld [vmem:[%s2712_s1 + $0x24] sm:$0xf0]  ;;  %v1877_v32 = vld [vmem:[%s2712_s1 + $0x24] sm:$0xf]  ;;  %v1751_v33 = vld [vmem:[%s2712_s1 + $0x28] sm:$0xf0] }
  0x13   : > { %507 = vmatpush.bf16.msra.mxu1 %v1786_v11  ;;  %s2728_s18 = smov (!%p377_p3, %s1722_s18), 1  ;;  %v1750_v34 = vor.u32 %v1878_v31, %v1749_v30  ;;  %v1754_v35 = vor.u32 %v1877_v32, %v1751_v33  ;;  %v1741_v36 = vld [vmem:[%s2712_s1 + $0x10] sm:$0xf]  ;;  %v1876_v37 = vld [vmem:[%s2712_s1 + $0x14] sm:$0xf0]  ;;  %v2171_v51 = vld [vmem:[%s2714_s3 + $0x8] sm:$0xff] }
  0x14   : > { %v1875_v38 = vld [vmem:[%s2712_s1 + $0x14] sm:$0xf]  ;;  %v1743_v39 = vld [vmem:[%s2712_s1 + $0x18] sm:$0xf0]  ;;  %s1871_s24 = sshll.u32 %s2728_s18, 4  ;;  %v1742_v40 = vor.u32 %v1876_v37, %v1741_v36  ;;  %v2176_v52 = vld [vmem:[%s2714_s3] sm:$0xff] }
  0x15   : > { %v1746_v41 = vor.u32 %v1875_v38, %v1743_v39  ;;  %v1733_v42 = vld [vmem:[%s2712_s1] sm:$0xf]  ;;  %v1874_v43 = vld [vmem:[%s2712_s1 + $0x4] sm:$0xf0]  ;;  %s2158_s12 = scalar_lea.vmem %s2711_s0, %s1871_s24  ;;  %v1873_v44 = vld [vmem:[%s2712_s1 + $0x4] sm:$0xf] }
  0x16   : > { %494 = vmatpush.bf16.msra.mxu0 %v1774_v16  ;;  %v1735_v45 = vld [vmem:[%s2712_s1 + $0x8] sm:$0xf0]  ;;  %v1734_v46 = vor.u32 %v1874_v43, %v1733_v42  ;;  %v387_v47 = vld [vmem:[%s2158_s12] sm:$0xff]  ;;  %v689_v53 = vperm.slane %v2171_v51, 1  ;;  %v688_v54 = vperm.slane %v2176_v52, 1  ;;  %v737_v55 = vperm.slane %v2176_v52, 2 }
  0x17   : > { %508 = vmatpush.bf16.msra.mxu1 %v1778_v17  ;;  %v388_v48 = vld [vmem:[%s2158_s12 + $0x8] sm:$0xff]  ;;  %v1738_v49 = vor.u32 %v1873_v44, %v1735_v45  ;;  %v826_v56 = vperm.slane %v2176_v52, 4  ;;  %v738_v57 = vperm.slane %v2171_v51, 2  ;;  %v827_v58 = vperm.slane %v2171_v51, 4  ;;  %v406_v61 = vld [vmem:[%s2713_s2] sm:$0x3] }
  0x18   : > { %v389_v50 = vpack.c.bf16 %v388_v48, %v387_v47  ;;  %694 = vrot.lane.b32.xlu1 %v689_v53, %s1978_s23  ;;  %692 = vrot.lane.b32.xlu0 %v688_v54, %s1978_s23  ;;  %v896_v59 = vperm.slane %v2171_v51, 5  ;;  %v895_v60 = vperm.slane %v2176_v52, 5  ;;  %v408_v62 = vperm.slane %v406_v61, 0  ;;  %v1927_v0 = vld [vmem:[%s2714_s3 + $0x10] ss:$0 sm:$0xff] }
  0x19   : > { %741 = vrot.lane.b32.xlu2 %v737_v55, %s1979_s25  ;;  %v1003_v63 = vperm.slane %v2176_v52, 7  ;;  %v1004_v1 = vperm.slane %v2171_v51, 7  ;;  %v409_v2 = vperm.slane %v406_v61, 1  ;;  %v1928_v9 = vld [vmem:[%s2714_s3 + $0x18] ss:$0 sm:$0xff] }
  0x1a   : > { %495 = vmatpush.bf16.msra.mxu0 %v1766_v22 }
  0x1b   : > { %509 = vmatpush.bf16.msra.mxu1 %v1770_v23 }
  0x1e   : > { %496 = vmatpush.bf16.msra.mxu0 %v1758_v28 }
  0x1f   : > { %510 = vmatpush.bf16.msra.mxu1 %v1762_v29 }
  0x20   : > { %830 = vrot.lane.b32.xlu1 %v826_v56, %s1978_s23  ;;  %743 = vrot.lane.b32.xlu0 %v738_v57, %s1979_s25 }
  0x21   : > { %832 = vrot.lane.b32.xlu2 %v827_v58, %s1978_s23 }
  0x22   : > { %497 = vmatpush.bf16.msra.mxu0 %v1750_v34 }
  0x23   : > { %511 = vmatpush.bf16.msra.mxu1 %v1754_v35 }
  0x26   : > { %498 = vmatpush.bf16.msra.mxu0 %v1742_v40 }
  0x27   : > { %512 = vmatpush.bf16.msra.mxu1 %v1746_v41 }
  0x28   : > { %901 = vrot.lane.b32.xlu1 %v896_v59, %s1979_s25  ;;  %899 = vrot.lane.b32.xlu0 %v895_v60, %s1979_s25 }
  0x29   : > { %1007 = vrot.lane.b32.xlu2 %v1003_v63, %s1978_s23 }
  0x2a   : > { %499 = vmatpush.bf16.msra.mxu0 %v1734_v46 }
  0x2b   : > { %513 = vmatpush.bf16.msra.mxu1 %v1738_v49 }
  0x2d   : > { %500 = vmatmul.bf16.vlgmr.msra.gmra.mxu0 %v389_v50 }
  0x2e   : > { %514 = vmatmul.bf16.vlgmr.msra.gmra.mxu1 %v389_v50 }
  0x30   : > { %1076 = vrot.lane.b32.xlu1 %v1927_v0, %s1979_s25  ;;  %1009 = vrot.lane.b32.xlu0 %v1004_v1, %s1978_s23 }
  0x31   : > { %1078 = vrot.lane.b32.xlu2 %v1928_v9, %s1979_s25 }
  0xaa   : > { %v501_v3 = vpop.f32.mrf.mxu0 }
  0xab   : > { %v502_v4 = vadd.f32 %v501_v3, %v408_v62  ;;  %v515_v5 = vpop.f32.mrf.mxu1 }
  0xac   : > { %v2205_v6 = vadd.f32 %v515_v5, %v409_v2 }
  0xad   : > { %v1795_v7 = vmul.f32 -1.442695, %v502_v4 }
  0xae   : > { %v1796_v8 = vmul.f32 -1.442695, %v2205_v6 }
  0xaf   : > { %1930 = vpow2.f32 %v1795_v7 }
  0xb0   : > { %1932 = vpow2.f32 %v1796_v8 }
  0xb2   : > { %v503_v10 = vpop.f32.mrf.mxu0 }
  0xb3   : > { %v2212_v11 = vadd.f32 %v503_v10, %v408_v62  ;;  %v517_v12 = vpop.f32.mrf.mxu1 }
  0xb4   : > { %v2214_v13 = vadd.f32 %v517_v12, %v409_v2  ;;  %v600_v12 = vlaneseq }
  0xb5   : > { %v1931_v14 = vpop.eup %1930  ;;  %v1797_v15 = vmul.f32 -1.442695, %v2212_v11 }
  0xb6   : > { %v1933_v16 = vpop.eup %1932  ;;  %v532_v17 = vadd.f32 1.0, %v1931_v14  ;;  %v1798_v18 = vmul.f32 -1.442695, %v2214_v13  ;;  %v1980_v14 = vmov 0.0  }
  0xb7   : > { %v533_v19 = vadd.f32 1.0, %v1933_v16  ;;  %1934 = vpow2.f32 %v1797_v15  ;;  %v693_v16 = vpop.permute.xlu0 %692 }
  0xb8   : > { %1936 = vrcp.f32 %v532_v17  ;;  %v547_v29 = vand.u32 2147483648, %v532_v17  ;;  %v545_v32 = vand.u32 2147483647, %v532_v17  ;;  %vm541_vm1 = vweird.f32 %v532_v17 }
  0xb9   : > { %1938 = vrcp.f32 %v533_v19  ;;  %vm556_vm2 = vweird.f32 %v533_v19  ;;  %v560_v38 = vand.u32 2147483647, %v533_v19  ;;  %v562_v39 = vand.u32 2147483648, %v533_v19 }
  0xba   : > { %1940 = vpow2.f32 %v1798_v18  ;;  %v548_v36 = vor.u32 1.1754944e-38, %v547_v29  ;;  %vm546_vm5 = vcmp.eq.f32.partialorder %v545_v32, 8.507059e+37 }
  0xbb   : > { %vm561_vm7 = vcmp.eq.f32.partialorder %v560_v38, 8.507059e+37  ;;  %v563_v47 = vor.u32 1.1754944e-38, %v562_v39 }
  0xbd   : > { %v1935_v20 = vpop.eup %1934 }
  0xbe   : > { %v1937_v21 = vpop.eup %1936  ;;  %v534_v22 = vadd.f32 1.0, %v1935_v20 }
  0xbf   : > { %v1939_v23 = vpop.eup %1938  ;;  %v537_v24 = vmul.f32 %v1937_v21, %v532_v17  ;;  %vm542_vm0 = vweird.f32 %v1937_v21  ;;  %v2237_v18 = vpop.permute.xlu0 %743 }
  0xc0   : > { %v1941_v25 = vpop.eup %1940  ;;  %v552_v26 = vmul.f32 %v1939_v23, %v533_v19  ;;  %1942 = vrcp.f32 %v534_v22  ;;  %vm557_vm3 = vweird.f32 %v1939_v23  ;;  %vm543_vm4 = vmor %vm541_vm1, %vm542_vm0  ;;  %v577_v48 = vand.u32 2147483648, %v534_v22  ;;  %v2239_v19 = vpop.permute.xlu1 %694 }
  0xc1   : > { %v538_v27 = vsub.f32 1.0, %v537_v24  ;;  %v535_v28 = vadd.f32 1.0, %v1941_v25  ;;  %vm558_vm6 = vmor %vm556_vm2, %vm557_vm3  ;;  %v575_v54 = vand.u32 2147483647, %v534_v22  ;;  %vm571_vm9 = vweird.f32 %v534_v22 }
  0xc2   : > { %v553_v30 = vsub.f32 1.0, %v552_v26  ;;  %v578_v59 = vor.u32 1.1754944e-38, %v577_v48  ;;  %vm625_vm0 = vcmask 1040384   ;;  %vm613_vm1 = vcmask 122880  }
  0xc3   : > { %v539_v31 = vmul.f32 %v1937_v21, %v538_v27  ;;  %1944 = vrcp.f32 %v535_v28  ;;  %v592_v58 = vand.u32 2147483648, %v535_v28  ;;  %v590_v61 = vand.u32 2147483647, %v535_v28  ;;  %614 = vst.msk [vmem:[#allocation2 + $0x30] sm:$0x1] %vm613_vm1, %v1980_v14 }
  0xc4   : > { %v554_v33 = vmul.f32 %v1939_v23, %v553_v30  ;;  %vm576_vm12 = vcmp.eq.f32.partialorder %v575_v54, 8.507059e+37  ;;  %vm586_vm13 = vweird.f32 %v535_v28  ;;  %vm611_vm2 = vcmask 130048  }
  0xc5   : > { %v540_v34 = vadd.f32 %v1937_v21, %v539_v31  ;;  %v593_v3 = vor.u32 1.1754944e-38, %v592_v58  ;;  %vm591_vm15 = vcmp.eq.f32.partialorder %v590_v61, 8.507059e+37  ;;  %vm602_vm3 = vcmp.lt.s32.totalorder %v600_v12, 288  ;;  %612 = vst.msk [vmem:[#allocation2 + $0x18] sm:$0xff] %vm611_vm2, %v1980_v14 }
  0xc6   : > { %v1943_v35 = vpop.eup %1942  ;;  %v555_v37 = vadd.f32 %v1939_v23, %v554_v33  ;;  %604 = vst.msk [vmem:[#allocation2] ss:$8 sm:$0x7] %vm602_vm3, %v1980_v14 }
  0xc7   : > { %v544_v40 = vsel %vm543_vm4, %v1937_v21, %v540_v34  ;;  %v567_v41 = vmul.f32 %v1943_v35, %v534_v22  ;;  %vm572_vm8 = vweird.f32 %v1943_v35  ;;  %607 = vst.msk [vmem:[#allocation2 + $0x31] ss:$8 sm:$0x7] %vm602_vm3, %v1980_v14  ;;  %vm619_vm4 = vcmask 254080   ;;  %v2243_v21 = vpop.permute.xlu0 %899 }
  0xc8   : > { %v549_v42 = vsel %vm546_vm5, %v548_v36, %v544_v40  ;;  %v559_v45 = vsel %vm558_vm6, %v1939_v23, %v555_v37  ;;  %vm573_vm10 = vmor %vm571_vm9, %vm572_vm8  ;;  %620 = vst.msk [vmem:[#allocation2 + $0x40] sm:$0x1] %vm619_vm4, %v1980_v14  ;;  %vm609_vm5 = vcmask 130049   ;;  %vm615_vm6 = vcmask 261249   ;;  %v2245_v22 = vpop.permute.xlu1 %830 }
  0xc9   : > { %v1945_v43 = vpop.eup %1944  ;;  %v596_v44 = vmul.f32 %v549_v42, %v502_v4  ;;  %v568_v46 = vsub.f32 1.0, %v567_v41  ;;  %v564_v55 = vsel %vm561_vm7, %v563_v47, %v559_v45  ;;  %610 = vst.msk [vmem:[#allocation2] sm:$0xfe] %vm609_vm5, %v1980_v14  ;;  %vm617_vm7 = vcmask 261248  }
  0xca   : > { %v582_v49 = vmul.f32 %v1945_v43, %v535_v28  ;;  %vm587_vm11 = vweird.f32 %v1945_v43  ;;  %v597_v62 = vmul.f32 %v564_v55, %v2205_v6  ;;  %616 = vst.msk [vmem:[#allocation2 + $0x10] sm:$0xfe] %vm615_vm6, %v1980_v14  ;;  %vm664_vm8 = vcmask 1040512  }
  0xcb   : > { %v626_v50 = vrot.slane %v596_v44, 7  ;;  %v569_v53 = vmul.f32 %v1943_v35, %v568_v46  ;;  %vm588_vm14 = vmor %vm586_vm13, %vm587_vm11  ;;  %618 = vst.msk [vmem:[#allocation2 + $0x28] sm:$0xff] %vm617_vm7, %v1980_v14  ;;  %vm656_vm9 = vcmask 1047681   ;;  %v696_v36 = vsel %vm611_vm2, %v693_v16, %v2239_v19 }
  0xcc   : > { %v583_v56 = vsub.f32 1.0, %v582_v49  ;;  %v627_v5 = vrot.slane %v597_v62, 7  ;;  %vm745_vm11 = vcmask 261120   ;;  %v968_v44 = vperm.slane %v2176_v52, 6 }
  0xcd   : > { %v570_v57 = vadd.f32 %v1943_v35, %v569_v53  ;;  %632 = vrot.lane.b32.xlu0 %v626_v50, %s1978_s23  ;;  %v791_v49 = vperm.slane %v2176_v52, 3  ;;  %vm982_vm13 = vcmask 1045504  }
  0xce   : > { %v584_v60 = vmul.f32 %v1945_v43, %v583_v56  ;;  %v792_v56 = vperm.slane %v2171_v51, 3 }
  0xcf   : > { %v574_v63 = vsel %vm573_vm10, %v1943_v35, %v570_v57  ;;  %v2247_v24 = vpop.permute.xlu0 %1009  ;;  %vm660_vm10 = vcmask 1047680  }
  0xd0   : > { %v579_v0 = vsel %vm576_vm12, %v578_v59, %v574_v63  ;;  %v585_v1 = vadd.f32 %v1945_v43, %v584_v60  ;;  %v2249_v25 = vpop.permute.xlu1 %901  ;;  %vm805_vm12 = vcmask 1046528  }
  0xd1   : > { %v598_v2 = vmul.f32 %v579_v0, %v2212_v11 }
  0xd2   : > { %v589_v4 = vsel %vm588_vm14, %v1945_v43, %v585_v1  ;;  %v969_v1 = vperm.slane %v2171_v51, 6  ;;  %vm724_vm14 = vcmask 916480  }
  0xd3   : > { %v628_v7 = vrot.slane %v598_v2, 7  ;;  %v594_v8 = vsel %vm591_vm15, %v593_v3, %v589_v4  ;;  %vm774_vm15 = vcmask 785408  }
  0xd4   : > { %v599_v9 = vmul.f32 %v594_v8, %v2214_v13  ;;  %v2230_v13 = vpop.permute.xlu2 %741 }
  0xd5   : > { %640 = vrot.lane.b32.xlu2 %v628_v7, %s1978_s23  ;;  %634 = vrot.lane.b32.xlu0 %v627_v5, %s1978_s23  ;;  %v629_v6 = vsel %vm625_vm0, %v626_v50, %v628_v7  ;;  %v2284_v46 = vsel %vm745_vm11, %v2230_v13, %v2237_v18 }
  0xd6   : > { %636 = vrot.lane.b32.xlu1 %v629_v6, %s1978_s23  ;;  %v630_v10 = vrot.slane %v599_v9, 7 }
  0xd8   : > { %v631_v11 = vsel %vm625_vm0, %v627_v5, %v630_v10  ;;  %v2253_v29 = vpop.permute.xlu1 %1076 }
  0xdc   : > { %v2232_v15 = vpop.permute.xlu2 %832 }
  0xdd   : > { %642 = vrot.lane.b32.xlu2 %v630_v10, %s1978_s23  ;;  %v2320_v2 = vsel %vm611_vm2, %v2245_v22, %v2232_v15 }
  0xde   : > { %638 = vrot.lane.b32.xlu1 %v631_v11, %s1978_s23 }
  0xe4   : > { %v2235_v17 = vpop.permute.xlu2 %1007 }
  0xec   : > { %v2241_v20 = vpop.permute.xlu2 %1078 }
  0xed   : > { %v1080_v50 = vsel %vm745_vm11, %v2253_v29, %v2241_v20 }
 0x12f   : > { %v641_v23 = vpop.permute.xlu2 %640 }
 0x130   : > { %665 = vst.msk [vmem:[#allocation2 + $0x30] sm:$0x1] %vm664_vm8, %v641_v23 }
 0x137   : > { %v643_v26 = vpop.permute.xlu2 %642  ;;  %v2279_v45 = vld [vmem:[#allocation2 + $0x30] sm:$0x3] }
 0x138   : > { %v646_v27 = vsel %vm611_vm2, %v641_v23, %v643_v26  ;;  %667 = vst.msk [vmem:[#allocation2 + $0x40] sm:$0x1] %vm613_vm1, %v643_v26  ;;  %v2294_v54 = vld [vmem:[#allocation2 + $0x30] sm:$0x1]  ;;  %v2300_v57 = vmul.f32 %v968_v44, %v2279_v45 }
 0x139   : > { %666 = vst [vmem:[#allocation2 + $0x38] sm:$0x1] %v646_v27  ;;  %v797_v62 = vmul.f32 %v791_v49, %v2294_v54 }
 0x13a   : > { %v989_v3 = vrot.slane %v2300_v57, 2 }
 0x13f   : > { %v633_v28 = vpop.permute.xlu0 %632 }
 0x140   : > { %657 = vst.msk [vmem:[#allocation2] sm:$0xfe] %vm656_vm9, %v633_v28  ;;  %v2296_v55 = vld [vmem:[#allocation2 + $0x38] sm:$0x3] }
 0x141   : > { %v2304_v58 = vld [vmem:[#allocation2 + $0x38] sm:$0x1]  ;;  %v1091_v61 = vmul.f32 %v1080_v50, %v2296_v55 }
 0x142   : > { %v798_v0 = vmul.f32 %v792_v56, %v2304_v58 }
 0x143   : > { %v1113_v14 = vrot.slane %v1091_v61, 2 }
 0x144   : > { %v814_v27 = vrot.slane %v798_v0, 1 }
 0x147   : > { %v635_v30 = vpop.permute.xlu0 %634  ;;  %v2255_v31 = vld [vmem:[#allocation2] sm:$0xff] }
 0x148   : > { %v644_v32 = vsel %vm611_vm2, %v633_v28, %v635_v30  ;;  %659 = vst.msk [vmem:[#allocation2 + $0x10] sm:$0xfe] %vm609_vm5, %v635_v30  ;;  %v637_v33 = vpop.permute.xlu1 %636  ;;  %v700_v34 = vmul.f32 %v693_v16, %v2255_v31  ;;  %v750_v38 = vmul.f32 %v2230_v13, %v2255_v31  ;;  %v2307_v59 = vld [vmem:[#allocation2] sm:$0xfe]  ;;  %v975_v28 = vmul.f32 %v969_v1, %v2296_v55 }
 0x149   : > { %658 = vst [vmem:[#allocation2 + $0x8] sm:$0xfe] %v644_v32  ;;  %v2329_v7 = vld [vmem:[#allocation2] sm:$0xfc]  ;;  %v793_v6 = vmul.f32 %v791_v49, %v2307_v59  ;;  %v838_v30 = vmul.f32 %v2245_v22, %v2307_v59 }
 0x14a   : > { %661 = vst.msk [vmem:[#allocation2 + $0x18] sm:$0xff] %vm660_vm10, %v637_v33  ;;  %712 = vrot.lane.b32.xlu0 %v700_v34, %s1981_s14 }
 0x14b   : > { %v856_v57 = vrot.slane %v838_v30, 1 }
 0x14f   : > { %v686_v35 = vld [vmem:[#allocation2 + $0x10] sm:$0xff] }
 0x150   : > { %v639_v37 = vpop.permute.xlu1 %638  ;;  %v702_v39 = vmul.f32 %v2239_v19, %v686_v35  ;;  %v2266_v40 = vld [vmem:[#allocation2 + $0x8] sm:$0xff]  ;;  %v752_v47 = vmul.f32 %v2237_v18, %v686_v35 }
 0x151   : > { %v2269_v41 = vsel %vm611_vm2, %v637_v33, %v639_v37  ;;  %663 = vst.msk [vmem:[#allocation2 + $0x28] sm:$0xff] %vm611_vm2, %v639_v37  ;;  %v701_v42 = vmul.f32 %v696_v36, %v2266_v40  ;;  %v2276_v43 = vld [vmem:[#allocation2 + $0x18] sm:$0xff]  ;;  %v751_v53 = vmul.f32 %v2284_v46, %v2266_v40  ;;  %v2309_v60 = vld [vmem:[#allocation2 + $0x8] sm:$0xfc] }
 0x152   : > { %762 = vrot.lane.b32.xlu0 %v750_v38, %s1982_s15  ;;  %716 = vrot.lane.b32.xlu2 %v702_v39, %s1981_s14  ;;  %v703_v48 = vmul.f32 %v693_v16, %v2276_v43  ;;  %v2325_v4 = vmul.f32 %v2245_v22, %v2276_v43  ;;  %v2327_v5 = vld [vmem:[#allocation2 + $0x8] sm:$0xfe]  ;;  %v1085_v8 = vmul.f32 %v1080_v50, %v2309_v60  ;;  %v812_v16 = vrot.slane %v797_v62, 1 }
 0x153   : > { %714 = vrot.lane.b32.xlu1 %v701_v42, %s1981_s14  ;;  %v1088_v9 = vmul.f32 %v1080_v50, %v2269_v41  ;;  %v753_v10 = vmul.f32 %v2230_v13, %v2276_v43  ;;  %v704_v23 = vmul.f32 %v696_v36, %v2269_v41  ;;  %v794_v13 = vmul.f32 %v792_v56, %v2327_v5 }
 0x154   : > { %v1105_v26 = vrot.slane %v1085_v8, 2  ;;  %v857_v33 = vrot.slane %v2325_v4, 1  ;;  %v795_v34 = vmul.f32 %v791_v49, %v2276_v43  ;;  %v796_v35 = vmul.f32 %v792_v56, %v2269_v41 }
 0x155   : > { %v1106_v32 = vrot.slane %v1088_v9, 2  ;;  %v806_v36 = vrot.slane %v793_v6, 1  ;;  %v809_v39 = vrot.slane %v794_v13, 1  ;;  %v971_v42 = vmul.f32 %v969_v1, %v2309_v60 }
 0x156   : > { %v972_v50 = vmul.f32 %v968_v44, %v2276_v43  ;;  %v991_v56 = vrot.slane %v975_v28, 2  ;;  %v839_v9 = vmul.f32 %v2320_v2, %v2327_v5 }
 0x157   : > { %v2351_v37 = vsel %vm982_vm13, %v1105_v26, %v1106_v32  ;;  %v2354_v38 = vsel %vm982_vm13, %v1106_v32, %v1113_v14  ;;  %v986_v61 = vrot.slane %v971_v42, 2  ;;  %v754_v14 = vmul.f32 %v2284_v46, %v2269_v41 }
 0x158   : > { %v2313_v63 = vld [vmem:[#allocation2 + $0x28] sm:$0xff]  ;;  %v984_v6 = vrot.slane %v972_v50, 2  ;;  %v844_v46 = vmul.f32 %v2245_v22, %v2294_v54  ;;  %v859_v13 = vrot.slane %v839_v9, 1  ;;  %v910_v42 = vmul.f32 %v2243_v21, %v2276_v43 }
 0x159   : > { %v705_v11 = vmul.f32 %v2239_v19, %v2313_v63  ;;  %v970_v19 = vmul.f32 %v968_v44, %v2329_v7  ;;  %v755_v44 = vmul.f32 %v2237_v18, %v2313_v63 }
 0x15a   : > { %766 = vrot.lane.b32.xlu2 %v752_v47, %s1982_s15  ;;  %718 = vrot.lane.b32.xlu0 %v703_v48, %s1981_s14  ;;  %v807_v47 = vrot.slane %v795_v34, 1  ;;  %v810_v48 = vrot.slane %v796_v35, 1  ;;  %v865_v34 = vrot.slane %v844_v46, 1  ;;  %v926_v50 = vrot.slane %v910_v42, 1 }
 0x15b   : > { %764 = vrot.lane.b32.xlu1 %v751_v53, %s1982_s15  ;;  %v973_v53 = vmul.f32 %v969_v1, %v2269_v41  ;;  %v983_v49 = vrot.slane %v970_v19, 2  ;;  %v824_v1 = vld [vmem:[#allocation2 + $0x10] sm:$0xfe]  ;;  %v1011_v42 = vsel %vm611_vm2, %v2235_v17, %v2247_v24 }
 0x15c   : > { %v2360_v62 = vsel %vm805_vm12, %v806_v36, %v807_v47  ;;  %v2363_v0 = vsel %vm805_vm12, %v809_v39, %v810_v48  ;;  %v2366_v4 = vsel %vm805_vm12, %v807_v47, %v812_v16  ;;  %v2369_v8 = vsel %vm805_vm12, %v810_v48, %v814_v27  ;;  %v825_v36 = vld [vmem:[#allocation2 + $0x40] sm:$0x1] }
 0x15d   : > { %v843_v16 = vmul.f32 %v2232_v15, %v2313_v63  ;;  %v2385_v18 = vsel %vm982_vm13, %v983_v49, %v984_v6  ;;  %v2391_v27 = vsel %vm982_vm13, %v984_v6, %v989_v3  ;;  %v840_v28 = vmul.f32 %v2232_v15, %v824_v1 }
 0x15e   : > { %v866_v39 = vsel %vm805_vm12, %v857_v33, %v865_v34  ;;  %v907_v47 = vmul.f32 %v2243_v21, %v2307_v59  ;;  %v846_v48 = vmul.f32 %v2232_v15, %v825_v36  ;;  %v912_v59 = vmul.f32 %v2249_v25, %v2313_v63 }
 0x15f   : > { %v863_v32 = vrot.slane %v843_v16, 1  ;;  %v862_v35 = vrot.slane %v840_v28, 1  ;;  %v913_v6 = vmul.f32 %v2243_v21, %v2294_v54  ;;  %v1015_v54 = vmul.f32 %v2235_v17, %v2329_v7 }
 0x161   : > { %v864_v3 = vsel %vm805_vm12, %v862_v35, %v863_v32  ;;  %v1033_v34 = vrot.slane %v1015_v54, 2 }
 0x162   : > { %768 = vrot.lane.b32.xlu0 %v753_v10, %s1982_s15  ;;  %722 = vrot.lane.b32.xlu2 %v705_v11, %s1981_s14  ;;  %v987_v10 = vrot.slane %v973_v53, 2  ;;  %v858_v11 = vsel %vm805_vm12, %v856_v57, %v857_v33  ;;  %v845_v33 = vmul.f32 %v2320_v2, %v2304_v58  ;;  %v925_v53 = vrot.slane %v907_v47, 1 }
 0x163   : > { %720 = vrot.lane.b32.xlu1 %v704_v23, %s1981_s14  ;;  %v842_v23 = vmul.f32 %v2320_v2, %v2269_v41  ;;  %v869_v57 = vrot.slane %v846_v48, 1  ;;  %v1020_v48 = vmul.f32 %v2247_v24, %v2313_v63 }
 0x164   : > { %v2388_v26 = vsel %vm982_vm13, %v986_v61, %v987_v10  ;;  %v2398_v30 = vsel %vm982_vm13, %v987_v10, %v991_v56  ;;  %v867_v49 = vrot.slane %v845_v33, 1  ;;  %v903_v61 = vsel %vm745_vm11, %v2243_v21, %v2249_v25 }
 0x165   : > { %v860_v19 = vrot.slane %v842_v23, 1  ;;  %v927_v56 = vsel %vm805_vm12, %v925_v53, %v926_v50  ;;  %v908_v2 = vmul.f32 %v903_v61, %v2327_v5  ;;  %v911_v9 = vmul.f32 %v903_v61, %v2269_v41 }
 0x166   : > { %v909_v10 = vmul.f32 %v2249_v25, %v824_v1  ;;  %v934_v23 = vrot.slane %v913_v6, 1  ;;  %v1018_v5 = vmul.f32 %v2235_v17, %v2276_v43  ;;  %v915_v1 = vmul.f32 %v2249_v25, %v825_v36 }
 0x167   : > { %v861_v22 = vsel %vm805_vm12, %v859_v13, %v860_v19  ;;  %v868_v15 = vsel %vm805_vm12, %v860_v19, %v867_v49  ;;  %v929_v16 = vrot.slane %v911_v9, 1  ;;  %v914_v13 = vmul.f32 %v903_v61, %v2304_v58 }
 0x168   : > { %v931_v46 = vrot.slane %v909_v10, 1  ;;  %v935_v28 = vsel %vm805_vm12, %v926_v50, %v934_v23  ;;  %v1034_v19 = vrot.slane %v1018_v5, 2  ;;  %v938_v35 = vrot.slane %v915_v1, 1 }
 0x169   : > { %v1016_v58 = vmul.f32 %v1011_v42, %v2309_v60  ;;  %v1019_v36 = vmul.f32 %v1011_v42, %v2269_v41  ;;  %v1021_v33 = vmul.f32 %v2235_v17, %v2279_v45  ;;  %v1040_v53 = vrot.slane %v1020_v48, 2 }
 0x16a   : > { %871 = vrot.lane.b32.xlu0 %v858_v11, %s1981_s14  ;;  %772 = vrot.lane.b32.xlu2 %v755_v44, %s1982_s15  ;;  %v870_v44 = vsel %vm805_vm12, %v863_v32, %v869_v57  ;;  %v932_v11 = vrot.slane %v912_v59, 1  ;;  %v1087_v60 = vmul.f32 %v2253_v29, %v2276_v43  ;;  %v1022_v6 = vmul.f32 %v1011_v42, %v2296_v55 }
 0x16b   : > { %770 = vrot.lane.b32.xlu1 %v754_v14, %s1982_s15  ;;  %v928_v14 = vrot.slane %v908_v2, 1  ;;  %v1036_v57 = vrot.slane %v1016_v58, 2  ;;  %v1037_v49 = vrot.slane %v1019_v36, 2  ;;  %v1042_v61 = vrot.slane %v1021_v33, 2 }
 0x16c   : > { %v933_v32 = vsel %vm805_vm12, %v931_v46, %v932_v11  ;;  %v939_v47 = vsel %vm805_vm12, %v932_v11, %v938_v35  ;;  %v1084_v2 = vmul.f32 %v2253_v29, %v2329_v7  ;;  %v1103_v10 = vrot.slane %v1087_v60, 2 }
 0x16d   : > { %v930_v21 = vsel %vm805_vm12, %v928_v14, %v929_v16  ;;  %v1043_v59 = vsel %vm982_vm13, %v1034_v19, %v1042_v61  ;;  %v1038_v17 = vsel %vm982_vm13, %v1036_v57, %v1037_v49  ;;  %v676_v35 = vperm.slane %v2176_v52, 0 }
 0x16e   : > { %v1102_v11 = vrot.slane %v1084_v2, 2 }
 0x170   : > { %v1104_v23 = vsel %vm982_vm13, %v1102_v11, %v1103_v10 }
 0x172   : > { %877 = vrot.lane.b32.xlu0 %v866_v39, %s1981_s14  ;;  %875 = vrot.lane.b32.xlu2 %v864_v3, %s1981_s14  ;;  %v936_v39 = vrot.slane %v914_v13, 1  ;;  %v1001_v3 = vld [vmem:[#allocation2 + $0x10] sm:$0xfc] }
 0x173   : > { %873 = vrot.lane.b32.xlu1 %v861_v22, %s1981_s14  ;;  %v1035_v22 = vsel %vm982_vm13, %v1033_v34, %v1034_v19  ;;  %v1017_v50 = vmul.f32 %v2247_v24, %v1001_v3  ;;  %v1086_v55 = vmul.f32 %v2241_v20, %v1001_v3 }
 0x174   : > { %v937_v25 = vsel %vm805_vm12, %v929_v16, %v936_v39  ;;  %v1044_v16 = vrot.slane %v1022_v6, 2  ;;  %v677_v39 = vperm.slane %v2171_v51, 0 }
 0x176   : > { %v1045_v7 = vsel %vm982_vm13, %v1037_v49, %v1044_v16  ;;  %v679_v42 = vmul.f32 %v677_v39, %v2266_v40 }
 0x17a   : > { %940 = vrot.lane.b32.xlu0 %v927_v56, %s1982_s15  ;;  %881 = vrot.lane.b32.xlu2 %v870_v44, %s1981_s14  ;;  %v1039_v56 = vrot.slane %v1017_v50, 2  ;;  %v1002_v44 = vld [vmem:[#allocation2 + $0x40] sm:$0x3] }
 0x17b   : > { %879 = vrot.lane.b32.xlu1 %v868_v15, %s1981_s14  ;;  %v1023_v9 = vmul.f32 %v2247_v24, %v1002_v44  ;;  %v1090_v24 = vmul.f32 %v2253_v29, %v2279_v45  ;;  %v1092_v29 = vmul.f32 %v2241_v20, %v1002_v44 }
 0x17c   : > { %v1041_v15 = vsel %vm982_vm13, %v1039_v56, %v1040_v53 }
 0x17d   : > { %v1046_v14 = vrot.slane %v1023_v9, 2  ;;  %v1111_v5 = vrot.slane %v1090_v24, 2  ;;  %v1115_v45 = vrot.slane %v1092_v29, 2 }
 0x17f   : > { %v1047_v46 = vsel %vm982_vm13, %v1040_v53, %v1046_v14  ;;  %v1112_v54 = vsel %vm982_vm13, %v1103_v10, %v1111_v5 }
 0x182   : > { %946 = vrot.lane.b32.xlu0 %v935_v28, %s1982_s15  ;;  %944 = vrot.lane.b32.xlu2 %v933_v32, %s1982_s15  ;;  %v1089_v28 = vmul.f32 %v2241_v20, %v2313_v63  ;;  %v678_v20 = vmul.f32 %v676_v35, %v2255_v31 }
 0x183   : > { %942 = vrot.lane.b32.xlu1 %v930_v21, %s1982_s15  ;;  %v1108_v21 = vrot.slane %v1086_v55, 2 }
 0x184   : > { %v1109_v32 = vrot.slane %v1089_v28, 2 }
 0x186   : > { %v1110_v63 = vsel %vm982_vm13, %v1108_v21, %v1109_v32  ;;  %v1116_v1 = vsel %vm982_vm13, %v1109_v32, %v1115_v45 }
 0x18a   : > { %1048 = vrot.lane.b32.xlu0 %v1035_v22, %s1981_s14  ;;  %950 = vrot.lane.b32.xlu2 %v939_v47, %s1982_s15 }
 0x18b   : > { %948 = vrot.lane.b32.xlu1 %v937_v25, %s1982_s15 }
 0x192   : > { %1054 = vrot.lane.b32.xlu0 %v1043_v59, %s1981_s14  ;;  %1052 = vrot.lane.b32.xlu2 %v1041_v15, %s1981_s14  ;;  %v680_v59 = vmul.f32 %v676_v35, %v2276_v43  ;;  %v681_v15 = vmul.f32 %v677_v39, %v2269_v41 }
 0x193   : > { %1050 = vrot.lane.b32.xlu1 %v1038_v17, %s1981_s14 }
 0x19a   : > { %1117 = vrot.lane.b32.xlu0 %v1104_v23, %s1982_s15  ;;  %1058 = vrot.lane.b32.xlu2 %v1047_v46, %s1981_s14 }
 0x19b   : > { %1056 = vrot.lane.b32.xlu1 %v1045_v7, %s1981_s14 }
 0x1a2   : > { %1123 = vrot.lane.b32.xlu0 %v1112_v54, %s1982_s15  ;;  %1121 = vrot.lane.b32.xlu2 %v1110_v63, %s1982_s15 }
 0x1a3   : > { %1119 = vrot.lane.b32.xlu1 %v2351_v37, %s1982_s15 }
 0x1aa   : > { %1127 = vrot.lane.b32.xlu2 %v1116_v1, %s1982_s15 }
 0x1ab   : > { %1125 = vrot.lane.b32.xlu1 %v2354_v38, %s1982_s15 }
 0x1ac   : > { %v717_v13 = vpop.permute.xlu2 %716 }
 0x1b4   : > { %v767_v19 = vpop.permute.xlu2 %766 }
 0x1bc   : > { %v713_v34 = vpop.permute.xlu0 %712  ;;  %v723_v3 = vpop.permute.xlu2 %722 }
 0x1c4   : > { %v763_v37 = vpop.permute.xlu0 %762  ;;  %v773_v58 = vpop.permute.xlu2 %772 }
 0x1c5   : > { %v715_v22 = vpop.permute.xlu1 %714 }
 0x1c6   : > { %v725_v47 = vsel %vm724_vm14, %v713_v34, %v715_v22  ;;  %v726_v48 = vsel %vm724_vm14, %v715_v22, %v717_v13 }
 0x1c7   : > { %v733_v38 = vadd.f32 %v725_v47, %v678_v20  ;;  %v734_v25 = vadd.f32 %v726_v48, %v679_v42 }
 0x1cc   : > { %v719_v36 = vpop.permute.xlu0 %718  ;;  %v876_v61 = vpop.permute.xlu2 %875 }
 0x1cd   : > { %v765_v52 = vpop.permute.xlu1 %764 }
 0x1ce   : > { %v775_v51 = vsel %vm774_vm15, %v763_v37, %v765_v52  ;;  %v776_v33 = vsel %vm774_vm15, %v765_v52, %v767_v19 }
 0x1cf   : > { %v783_v50 = vadd.f32 %v775_v51, %v733_v38  ;;  %v784_v53 = vadd.f32 %v776_v33, %v734_v25  ;;  %v1141_v33 = vld [vmem:[%s2715_s4] sm:$0x3] }
 0x1d1   : > { %v820_v31 = vadd.f32 %v2360_v62, %v783_v50  ;;  %v821_v40 = vadd.f32 %v2363_v0, %v784_v53 }
 0x1d4   : > { %v769_v57 = vpop.permute.xlu0 %768  ;;  %v882_v11 = vpop.permute.xlu2 %881 }
 0x1d5   : > { %v721_v49 = vpop.permute.xlu1 %720 }
 0x1d6   : > { %v727_v56 = vsel %vm724_vm14, %v719_v36, %v721_v49  ;;  %v728_v44 = vsel %vm724_vm14, %v721_v49, %v723_v3 }
 0x1d7   : > { %v735_v17 = vadd.f32 %v727_v56, %v680_v59  ;;  %v736_v2 = vadd.f32 %v728_v44, %v681_v15 }
 0x1dc   : > { %v872_v60 = vpop.permute.xlu0 %871  ;;  %v945_v43 = vpop.permute.xlu2 %944 }
 0x1dd   : > { %v771_v9 = vpop.permute.xlu1 %770 }
 0x1de   : > { %v777_v6 = vsel %vm774_vm15, %v769_v57, %v771_v9  ;;  %v778_v62 = vsel %vm774_vm15, %v771_v9, %v773_v58 }
 0x1df   : > { %v785_v0 = vadd.f32 %v777_v6, %v735_v17  ;;  %v786_v10 = vadd.f32 %v778_v62, %v736_v2 }
 0x1e1   : > { %v822_v14 = vadd.f32 %v2366_v4, %v785_v0  ;;  %v823_v16 = vadd.f32 %v2369_v8, %v786_v10 }
 0x1e4   : > { %v878_v23 = vpop.permute.xlu0 %877  ;;  %v951_v55 = vpop.permute.xlu2 %950 }
 0x1e5   : > { %v874_v46 = vpop.permute.xlu1 %873 }
 0x1e6   : > { %v883_v7 = vsel %vm724_vm14, %v872_v60, %v874_v46  ;;  %v884_v24 = vsel %vm724_vm14, %v874_v46, %v876_v61 }
 0x1e7   : > { %v891_v32 = vadd.f32 %v883_v7, %v820_v31  ;;  %v892_v5 = vadd.f32 %v884_v24, %v821_v40  ;;  %v1143_v40 = vperm.slane %v1141_v33, 0 }
 0x1ec   : > { %v941_v28 = vpop.permute.xlu0 %940  ;;  %v1053_v3 = vpop.permute.xlu2 %1052 }
 0x1ed   : > { %v880_v41 = vpop.permute.xlu1 %879 }
 0x1ee   : > { %v885_v13 = vsel %vm724_vm14, %v878_v23, %v880_v41  ;;  %v886_v19 = vsel %vm724_vm14, %v880_v41, %v882_v11 }
 0x1ef   : > { %v893_v34 = vadd.f32 %v885_v13, %v822_v14  ;;  %v894_v35 = vadd.f32 %v886_v19, %v823_v16 }
 0x1f4   : > { %v947_v21 = vpop.permute.xlu0 %946  ;;  %v1059_v38 = vpop.permute.xlu2 %1058 }
 0x1f5   : > { %v943_v54 = vpop.permute.xlu1 %942 }
 0x1f6   : > { %v952_v63 = vsel %vm774_vm15, %v941_v28, %v943_v54  ;;  %v953_v4 = vsel %vm774_vm15, %v943_v54, %v945_v43 }
 0x1f7   : > { %v960_v29 = vadd.f32 %v952_v63, %v891_v32  ;;  %v961_v8 = vadd.f32 %v953_v4, %v892_v5 }
 0x1f9   : > { %v997_v45 = vadd.f32 %v2385_v18, %v960_v29  ;;  %v998_v1 = vadd.f32 %v2388_v26, %v961_v8 }
 0x1fc   : > { %v1049_v42 = vpop.permute.xlu0 %1048  ;;  %v1122_v36 = vpop.permute.xlu2 %1121 }
 0x1fd   : > { %v949_v39 = vpop.permute.xlu1 %948 }
 0x1fe   : > { %v954_v37 = vsel %vm774_vm15, %v947_v21, %v949_v39  ;;  %v955_v20 = vsel %vm774_vm15, %v949_v39, %v951_v55 }
 0x1ff   : > { %v962_v22 = vadd.f32 %v954_v37, %v893_v34  ;;  %v963_v47 = vadd.f32 %v955_v20, %v894_v35 }
 0x201   : > { %v999_v48 = vadd.f32 %v2391_v27, %v962_v22  ;;  %v1000_v18 = vadd.f32 %v2398_v30, %v963_v47  ;;  %v1144_v27 = vperm.slane %v1141_v33, 1 }
 0x204   : > { %v1055_v25 = vpop.permute.xlu0 %1054  ;;  %v1128_v9 = vpop.permute.xlu2 %1127 }
 0x205   : > { %v1051_v26 = vpop.permute.xlu1 %1050 }
 0x206   : > { %v1060_v52 = vsel %vm724_vm14, %v1049_v42, %v1051_v26  ;;  %v1061_v51 = vsel %vm724_vm14, %v1051_v26, %v1053_v3 }
 0x207   : > { %v1068_v53 = vadd.f32 %v1060_v52, %v997_v45  ;;  %v1069_v31 = vadd.f32 %v1061_v51, %v998_v1 }
 0x20c   : > { %v1118_v50 = vpop.permute.xlu0 %1117 }
 0x20d   : > { %v1057_v58 = vpop.permute.xlu1 %1056 }
 0x20e   : > { %v1062_v15 = vsel %vm724_vm14, %v1055_v25, %v1057_v58  ;;  %v1063_v60 = vsel %vm724_vm14, %v1057_v58, %v1059_v38 }
 0x20f   : > { %v1070_v6 = vadd.f32 %v1062_v15, %v999_v48  ;;  %v1071_v62 = vadd.f32 %v1063_v60, %v1000_v18 }
 0x214   : > { %v1124_v0 = vpop.permute.xlu0 %1123 }
 0x215   : > { %v1120_v57 = vpop.permute.xlu1 %1119 }
 0x216   : > { %v1129_v30 = vsel %vm774_vm15, %v1118_v50, %v1120_v57  ;;  %v1130_v49 = vsel %vm774_vm15, %v1120_v57, %v1122_v36 }
 0x217   : > { %v1137_v61 = vadd.f32 %v1129_v30, %v1068_v53  ;;  %v1138_v56 = vadd.f32 %v1130_v49, %v1069_v31 }
 0x219   : > { %v2528_v44 = vadd.f32 %v1143_v40, %v1137_v61  ;;  %v2530_v59 = vadd.f32 %v1144_v27, %v1138_v56 }
 0x21b   : > { %v1799_v17 = vmul.f32 -1.442695, %v2528_v44  ;;  %v1800_v2 = vmul.f32 -1.442695, %v2530_v59 }
 0x21d   : > { %1946 = vpow2.f32 %v1799_v17  ;;  %v1126_v10 = vpop.permute.xlu1 %1125 }
 0x21e   : > { %1948 = vpow2.f32 %v1800_v2  ;;  %v1131_v11 = vsel %vm774_vm15, %v1124_v0, %v1126_v10  ;;  %v1132_v14 = vsel %vm774_vm15, %v1126_v10, %v1128_v9 }
 0x21f   : > { %v1139_v16 = vadd.f32 %v1131_v11, %v1070_v6  ;;  %v1140_v23 = vadd.f32 %v1132_v14, %v1071_v62 }
 0x221   : > { %v2538_v46 = vadd.f32 %v1143_v40, %v1139_v16  ;;  %v2540_v43 = vadd.f32 %v1144_v27, %v1140_v23 }
 0x223   : > { %v1947_v28 = vpop.eup %1946  ;;  %v1801_v41 = vmul.f32 -1.442695, %v2538_v46  ;;  %v1802_v55 = vmul.f32 -1.442695, %v2540_v43 }
 0x224   : > { %v1949_v7 = vpop.eup %1948  ;;  %v1163_v24 = vadd.f32 1.0, %v1947_v28 }
 0x225   : > { %v1164_v32 = vadd.f32 1.0, %v1949_v7  ;;  %1950 = vpow2.f32 %v1801_v41 }
 0x226   : > { %1952 = vrcp.f32 %v1163_v24  ;;  %vm1172_vm1 = vweird.f32 %v1163_v24  ;;  %v1176_v37 = vand.u32 2147483647, %v1163_v24  ;;  %v1178_v20 = vand.u32 2147483648, %v1163_v24 }
 0x227   : > { %1954 = vrcp.f32 %v1164_v32  ;;  %vm1187_vm3 = vweird.f32 %v1164_v32  ;;  %v1191_v22 = vand.u32 2147483647, %v1164_v32  ;;  %v1193_v38 = vand.u32 2147483648, %v1164_v32 }
 0x228   : > { %1956 = vpow2.f32 %v1802_v55  ;;  %vm1177_vm7 = vcmp.eq.f32.partialorder %v1176_v37, 8.507059e+37  ;;  %v1179_v51 = vor.u32 1.1754944e-38, %v1178_v20 }
 0x229   : > { %v1194_v61 = vor.u32 1.1754944e-38, %v1193_v38  ;;  %v1987_v38 = vmov 1934713408  }
 0x22b   : > { %v1951_v5 = vpop.eup %1950 }
 0x22c   : > { %v1953_v21 = vpop.eup %1952  ;;  %v1165_v54 = vadd.f32 1.0, %v1951_v5 }
 0x22d   : > { %v1955_v63 = vpop.eup %1954  ;;  %v1168_v4 = vmul.f32 %v1953_v21, %v1163_v24  ;;  %vm1173_vm0 = vweird.f32 %v1953_v21 }
 0x22e   : > { %v1957_v29 = vpop.eup %1956  ;;  %v1183_v8 = vmul.f32 %v1955_v63, %v1164_v32  ;;  %1958 = vrcp.f32 %v1165_v54  ;;  %v1208_v48 = vand.u32 2147483648, %v1165_v54  ;;  %vm2544_vm4 = vmor %vm1172_vm1, %vm1173_vm0  ;;  %vm1188_vm5 = vweird.f32 %v1955_v63 }
 0x22f   : > { %v1169_v45 = vsub.f32 1.0, %v1168_v4  ;;  %v1166_v1 = vadd.f32 1.0, %v1957_v29  ;;  %v1206_v52 = vand.u32 2147483647, %v1165_v54  ;;  %vm1202_vm8 = vweird.f32 %v1165_v54  ;;  %vm2551_vm9 = vmor %vm1187_vm3, %vm1188_vm5 }
 0x230   : > { %v1184_v13 = vsub.f32 1.0, %v1183_v8  ;;  %v1209_v31 = vor.u32 1.1754944e-38, %v1208_v48  ;;  %vm1192_vm0 = vcmp.eq.f32.partialorder %v1191_v22, 8.507059e+37  ;;  %v2597_v8 = vshrl.u32 %v600_v12, 7 }
 0x231   : > { %v1170_v19 = vmul.f32 %v1953_v21, %v1169_v45  ;;  %1960 = vrcp.f32 %v1166_v1  ;;  %v1221_v40 = vand.u32 2147483647, %v1166_v1  ;;  %v1223_v27 = vand.u32 2147483648, %v1166_v1 }
 0x232   : > { %v1185_v35 = vmul.f32 %v1955_v63, %v1184_v13  ;;  %vm1207_vm13 = vcmp.eq.f32.partialorder %v1206_v52, 8.507059e+37  ;;  %vm1217_vm1 = vweird.f32 %v1166_v1  ;;  %1923 = vset.pattern.permute.xlu2 %v2597_v8  ;;  %1925 = vset.pattern.permute.xlu1 %v2597_v8  ;;  %vm1290_vm5 = vcmask 1047556  }
 0x233   : > { %v1171_v39 = vadd.f32 %v1953_v21, %v1170_v19  ;;  %v1224_v9 = vor.u32 1.1754944e-38, %v1223_v27 }
 0x234   : > { %v1959_v34 = vpop.eup %1958  ;;  %v1186_v26 = vadd.f32 %v1955_v63, %v1185_v35 }
 0x235   : > { %v1198_v3 = vmul.f32 %v1959_v34, %v1165_v54  ;;  %v1175_v58 = vsel %vm2544_vm4, %v1953_v21, %v1171_v39  ;;  %vm1203_vm6 = vweird.f32 %v1959_v34  ;;  %vm1222_vm4 = vcmp.eq.f32.partialorder %v1221_v40, 8.507059e+37 }
 0x236   : > { %v1180_v57 = vsel %vm1177_vm7, %v1179_v51, %v1175_v58  ;;  %v1190_v30 = vsel %vm2551_vm9, %v1955_v63, %v1186_v26  ;;  %vm1204_vm10 = vmor %vm1202_vm8, %vm1203_vm6  ;;  %vm1392_vm6 = vcmask 31744  }
 0x237   : > { %v1961_v42 = vpop.eup %1960  ;;  %v1199_v47 = vsub.f32 1.0, %v1198_v3  ;;  %v1195_v17 = vsel %vm1192_vm0, %v1194_v61, %v1190_v30  ;;  %v2558_v2 = vmul.f32 %v1180_v57, %v2528_v44 }
 0x238   : > { %v1213_v25 = vmul.f32 %v1961_v42, %v1166_v1  ;;  %vm1218_vm12 = vweird.f32 %v1961_v42  ;;  %v2566_v11 = vmul.f32 %v1195_v17, %v2530_v59  ;;  %v1384_v1 = vadd.s32 8, %v2597_v8 }
 0x239   : > { %v1200_v36 = vmul.f32 %v1959_v34, %v1199_v47  ;;  %vm1219_vm3 = vmor %vm1217_vm1, %vm1218_vm12  ;;  %vm1433_vm12 = vcmask 125952  }
 0x23a   : > { %v1214_v33 = vsub.f32 1.0, %v1213_v25  ;;  %1924 = vset.pattern.permute.xlu0 %v1384_v1  ;;  %v1317_v25 = vunpack.c.l.s4 %v1987_v38 }
 0x23b   : > { %v1201_v53 = vadd.f32 %v1959_v34, %v1200_v36 }
 0x23c   : > { %v1215_v49 = vmul.f32 %v1961_v42, %v1214_v33  ;;  %v1318_v57 = vunpack.c.0.s8 %v1317_v25 }
 0x23d   : > { %v1205_v56 = vsel %vm1204_vm10, %v1959_v34, %v1201_v53  ;;  %v1986_v34 = vmov 1983009808  }
 0x23e   : > { %v1210_v15 = vsel %vm1207_vm13, %v1209_v31, %v1205_v56  ;;  %v1216_v60 = vadd.f32 %v1961_v42, %v1215_v49  ;;  %v1293_v35 = vunpack.c.l.s4 %v1986_v34 }
 0x23f   : > { %v2561_v6 = vmul.f32 %v1210_v15, %v2538_v46 }
 0x240   : > { %v1220_v62 = vsel %vm1219_vm3, %v1961_v42, %v1216_v60  ;;  %v1294_v20 = vunpack.c.0.s8 %v1293_v35 }
 0x241   : > { %v1225_v0 = vsel %vm1222_vm4, %v1224_v9, %v1220_v62  ;;  %v1231_v10 = vadd.f32 %v2561_v6, %v2558_v2  ;;  %vm1486_vm4 = vcmask 392192  }
 0x242   : > { %v2569_v14 = vmul.f32 %v1225_v0, %v2540_v43 }
 0x243   : > { %v1232_v16 = vrot.slane %v1231_v10, 4 }
 0x244   : > { %v1238_v44 = vadd.f32 %v2569_v14, %v2566_v11 }
 0x245   : > { %v1233_v23 = vadd.f32 %v1232_v16, %v1231_v10 }
 0x246   : > { %v1239_v28 = vrot.slane %v1238_v44, 4 }
 0x247   : > { %v1234_v46 = vrot.slane %v1233_v23, 2 }
 0x248   : > { %v1240_v41 = vadd.f32 %v1239_v28, %v1238_v44 }
 0x249   : > { %v1235_v7 = vadd.f32 %v1234_v46, %v1233_v23 }
 0x24a   : > { %v1241_v24 = vrot.slane %v1240_v41, 2 }
 0x24b   : > { %v1236_v55 = vrot.slane %v1235_v7, 1 }
 0x24c   : > { %v1242_v32 = vadd.f32 %v1241_v24, %v1240_v41 }
 0x24d   : > { %v1237_v5 = vadd.f32 %v1236_v55, %v1235_v7 }
 0x24e   : > { %v1243_v21 = vrot.slane %v1242_v32, 1 }
 0x24f   : > { %1252 = vrot.lane.b32.xlu2 %v1237_v5, %s1983_s20  ;;  %1264 = vrot.lane.b32.xlu0 %v1237_v5, %s1978_s23 }
 0x250   : > { %v2575_v59 = vadd.f32 %v1243_v21, %v1242_v32 }
 0x252   : > { %1286 = vrot.lane.b32.xlu1 %v2575_v59, %s1978_s23 }
 0x257   : > { %1274 = vrot.lane.b32.xlu2 %v2575_v59, %s1983_s20  ;;  %1258 = vrot.lane.b32.xlu0 %v1237_v5, %s1984_s21 }
 0x25a   : > { %1261 = vrot.lane.b32.xlu1 %v1237_v5, %s1979_s25 }
 0x25f   : > { %1246 = vrot.lane.b32.xlu2 %v1237_v5, %s1981_s14  ;;  %1280 = vrot.lane.b32.xlu0 %v2575_v59, %s1984_s21 }
 0x262   : > { %1283 = vrot.lane.b32.xlu1 %v2575_v59, %s1979_s25 }
 0x267   : > { %1268 = vrot.lane.b32.xlu2 %v2575_v59, %s1981_s14  ;;  %1249 = vrot.lane.b32.xlu0 %v1237_v5, %s1982_s15 }
 0x26a   : > { %1255 = vrot.lane.b32.xlu1 %v1237_v5, %s1985_s22 }
 0x26f   : > { %1271 = vrot.lane.b32.xlu0 %v2575_v59, %s1982_s15 }
 0x272   : > { %1277 = vrot.lane.b32.xlu1 %v2575_v59, %s1985_s22 }
 0x2a9   : > { %v1253_v43 = vpop.permute.xlu2 %1252 }
 0x2aa   : > { %v1296_v12 = vrot.slane %v1253_v43, 4 }
 0x2b1   : > { %v1275_v4 = vpop.permute.xlu2 %1274 }
 0x2b2   : > { %v1334_v58 = vrot.slane %v1275_v4, 4 }
 0x2b9   : > { %v1247_v13 = vpop.permute.xlu2 %1246 }
 0x2ba   : > { %v1297_v48 = vsel %vm1290_vm5, %v1296_v12, %v1247_v13 }
 0x2bb   : > { %v1301_v50 = vperm.slane %v1297_v48, %v1294_v20 }
 0x2bd   : > { %v1314_v15 = vrot.slane %v1301_v50, 4 }
 0x2c1   : > { %v1265_v54 = vpop.permute.xlu0 %1264  ;;  %v1269_v18 = vpop.permute.xlu2 %1268 }
 0x2c2   : > { %v1308_v3 = vrot.slane %v1265_v54, 4  ;;  %v1335_v53 = vsel %vm1290_vm5, %v1334_v58, %v1269_v18 }
 0x2c3   : > { %v1339_v61 = vperm.slane %v1335_v53, %v1294_v20 }
 0x2c4   : > { %v1287_v63 = vpop.permute.xlu1 %1286 }
 0x2c5   : > { %v1346_v52 = vrot.slane %v1287_v63, 4  ;;  %v1352_v44 = vrot.slane %v1339_v61, 4 }
 0x2c9   : > { %v1259_v29 = vpop.permute.xlu0 %1258 }
 0x2ca   : > { %v1309_v37 = vsel %vm1290_vm5, %v1308_v3, %v1259_v29  ;;  %v1388_v3 = vld [vmem:[%s2716_s5] sm:$0xff] }
 0x2cb   : > { %v1313_v22 = vperm.slane %v1309_v37, %v1294_v20 }
 0x2cc   : > { %v1262_v45 = vpop.permute.xlu1 %1261 }
 0x2cd   : > { %v1302_v26 = vrot.slane %v1262_v45, 4  ;;  %v1320_v31 = vrot.slane %v1313_v22, 4 }
 0x2d1   : > { %v1281_v19 = vpop.permute.xlu0 %1280 }
 0x2d2   : > { %v1347_v27 = vsel %vm1290_vm5, %v1346_v52, %v1281_v19 }
 0x2d3   : > { %v1351_v60 = vperm.slane %v1347_v27, %v1294_v20 }
 0x2d4   : > { %v1284_v39 = vpop.permute.xlu1 %1283 }
 0x2d5   : > { %v1340_v9 = vrot.slane %v1284_v39, 4  ;;  %v1358_v46 = vrot.slane %v1351_v60, 4 }
 0x2d9   : > { %v1250_v42 = vpop.permute.xlu0 %1249 }
 0x2da   : > { %v1289_v47 = vrot.slane %v1250_v42, 4 }
 0x2dc   : > { %v1256_v36 = vpop.permute.xlu1 %1255  ;;  %v1291_v33 = vsel %vm1290_vm5, %v1289_v47, %v1237_v5 }
 0x2dd   : > { %v1303_v51 = vsel %vm1290_vm5, %v1302_v26, %v1256_v36  ;;  %v1295_v49 = vperm.slane %v1291_v33, %v1294_v20  ;;  %v1402_v36 = vld [vmem:[%s2717_s6] sm:$0x1] }
 0x2de   : > { %v1307_v40 = vperm.slane %v1303_v51, %v1294_v20 }
 0x2df   : > { %v1315_v0 = vsel %vm1290_vm5, %v1314_v15, %v1295_v49 }
 0x2e0   : > { %v1321_v30 = vsel %vm1290_vm5, %v1320_v31, %v1307_v40  ;;  %v1319_v24 = vperm.slane %v1315_v0, %v1318_v57 }
 0x2e1   : > { %v1272_v56 = vpop.permute.xlu0 %1271  ;;  %v1325_v62 = vperm.slane %v1321_v30, %v1318_v57 }
 0x2e2   : > { %v1328_v17 = vrot.slane %v1272_v56, 4 }
 0x2e3   : > { %v1326_v7 = vrot.slane %v1325_v62, 4  ;;  %v1431_v62 = vld [vmem:[%s2718_s7] sm:$0xf] }
 0x2e4   : > { %v1278_v10 = vpop.permute.xlu1 %1277  ;;  %v1329_v16 = vsel %vm1290_vm5, %v1328_v17, %v2575_v59 }
 0x2e5   : > { %v1341_v23 = vsel %vm1290_vm5, %v1340_v9, %v1278_v10  ;;  %v1333_v28 = vperm.slane %v1329_v16, %v1294_v20  ;;  %v1327_v54 = vsel %vm1290_vm5, %v1326_v7, %v1319_v24  ;;  %v1441_v7 = vld [vmem:[%s2719_s8] sm:$0x1] }
 0x2e6   : > { %v1345_v41 = vperm.slane %v1341_v23, %v1294_v20  ;;  %v1366_v59 = vsel %vm611_vm2, %v1327_v54, 0.0  ;;  %v1389_v20 = vld [vmem:[%s2716_s5 + $0x8] sm:$0xff] }
 0x2e7   : > { %v1353_v55 = vsel %vm1290_vm5, %v1352_v44, %v1333_v28 }
 0x2e8   : > { %v1359_v32 = vsel %vm1290_vm5, %v1358_v46, %v1345_v41  ;;  %v1357_v21 = vperm.slane %v1353_v55, %v1318_v57 }
 0x2e9   : > { %v1363_v5 = vperm.slane %v1359_v32, %v1318_v57 }
 0x2eb   : > { %v1364_v43 = vrot.slane %v1363_v5, 4 }
 0x2ed   : > { %v1365_v63 = vsel %vm1290_vm5, %v1364_v43, %v1357_v21  ;;  %vm1488_vm5 = vcmask 523264  }
 0x2ee   : > { %v1367_v4 = vsel %vm611_vm2, %v1365_v63, 0.0 }
 0x2ef   : > { %v1368_v29 = vadd.f32 %v1367_v4, %v1366_v59 }
 0x2f1   : > { %v1369_v45 = vrot.slane %v1368_v29, 4 }
 0x2f3   : > { %v1370_v1 = vadd.f32 %v1369_v45, %v1368_v29 }
 0x2f5   : > { %v1371_v13 = vrot.slane %v1370_v1, 2 }
 0x2f7   : > { %v1372_v19 = vadd.f32 %v1371_v13, %v1370_v1 }
 0x2f9   : > { %v1373_v34 = vrot.slane %v1372_v19, 1 }
 0x2fb   : > { %v1374_v35 = vadd.f32 %v1373_v34, %v1372_v19  ;;  %v1896_v34 = vld [vmem:[%s2720_s9 + $0x38] sm:$0xff] }
 0x2fc   : > { %1633 = vmatpush.bf16.msra.mxu2 %v1896_v34 }
 0x2fd   : > { %v1375_v39 = vmul.f32 0.00390625, %v1374_v35  ;;  %v1904_v35 = vld [vmem:[%s2720_s9 + $0x78] sm:$0xff] }
 0x2fe   : > { %1647 = vmatpush.bf16.msra.mxu3 %v1904_v35 }
 0x2ff   : > { %1386 = vperm.xlu0 %1924, %v1375_v39   ;;  %1380 = vperm.xlu2 %1923, %v1375_v39   ;;  %v1895_v39 = vld [vmem:[%s2720_s9 + $0x30] sm:$0xff] }
 0x300   : > { %1634 = vmatpush.bf16.msra.mxu2 %v1895_v39 }
 0x307   : > { %1926 = vset.pattern.permute.xlu0 %v2597_v8 }
 0x359   : > { %v1381_v37 = vpop.permute.xlu2 %1380 }
 0x35a   : > { %v1390_v12 = vmul.f32 %v1388_v3, %v1381_v37  ;;  %v1903_v3 = vld [vmem:[%s2720_s9 + $0x70] sm:$0xff]  ;;  %v1894_v37 = vld [vmem:[%s2720_s9 + $0x28] sm:$0xff] }
 0x35b   : > { %1648 = vmatpush.bf16.msra.mxu3 %v1903_v3  ;;  %1635 = vmatpush.bf16.msra.mxu2 %v1894_v37 }
 0x35c   : > { %v1393_v47 = vsel %vm1392_vm6, %v1390_v12, 0.0  ;;  %v1893_v12 = vld [vmem:[%s2720_s9 + $0x20] sm:$0xff] }
 0x35f   : > { %1636 = vmatpush.bf16.msra.mxu2 %v1893_v12 }
 0x371   : > { %v1387_v42 = vpop.permute.xlu0 %1386 }
 0x372   : > { %v1391_v22 = vmul.f32 %v1389_v20, %v1387_v42  ;;  %v1902_v20 = vld [vmem:[%s2720_s9 + $0x68] sm:$0xff]  ;;  %v1901_v42 = vld [vmem:[%s2720_s9 + $0x60] sm:$0xff] }
 0x373   : > { %1649 = vmatpush.bf16.msra.mxu3 %v1902_v20 }
 0x374   : > { %v1394_v48 = vsel %vm1392_vm6, %v1391_v22, 0.0  ;;  %v1892_v22 = vld [vmem:[%s2720_s9 + $0x18] sm:$0xff]  ;;  %vm1490_vm6 = vcmask 654336  }
 0x375   : > { %v1395_v18 = vadd.f32 %v1394_v48, %v1393_v47  ;;  %v1900_v47 = vld [vmem:[%s2720_s9 + $0x58] sm:$0xff]  ;;  %1637 = vmatpush.bf16.msra.mxu2 %v1892_v22  ;;  %v1891_v48 = vld [vmem:[%s2720_s9 + $0x10] sm:$0xff] }
 0x377   : > { %v1396_v26 = vrot.slane %v1395_v18, 4  ;;  %1650 = vmatpush.bf16.msra.mxu3 %v1901_v42 }
 0x379   : > { %v1397_v38 = vadd.f32 %v1396_v26, %v1395_v18  ;;  %v1899_v18 = vld [vmem:[%s2720_s9 + $0x50] sm:$0xff]  ;;  %1638 = vmatpush.bf16.msra.mxu2 %v1891_v48  ;;  %v1890_v26 = vld [vmem:[%s2720_s9 + $0x8] sm:$0xff] }
 0x37b   : > { %v1398_v25 = vrot.slane %v1397_v38, 2  ;;  %1651 = vmatpush.bf16.msra.mxu3 %v1900_v47 }
 0x37d   : > { %v1399_v8 = vadd.f32 %v1398_v25, %v1397_v38  ;;  %v1898_v38 = vld [vmem:[%s2720_s9 + $0x48] sm:$0xff]  ;;  %1639 = vmatpush.bf16.msra.mxu2 %v1890_v26  ;;  %v1889_v25 = vld [vmem:[%s2720_s9] sm:$0xff] }
 0x37f   : > { %v1400_v58 = vrot.slane %v1399_v8, 1  ;;  %1652 = vmatpush.bf16.msra.mxu3 %v1899_v18 }
 0x381   : > { %v1401_v52 = vadd.f32 %v1400_v58, %v1399_v8  ;;  %v1897_v8 = vld [vmem:[%s2720_s9 + $0x40] sm:$0xff]  ;;  %1640 = vmatpush.bf16.msra.mxu2 %v1889_v25 }
 0x383   : > { %v1403_v51 = vadd.f32 %v1402_v36, %v1401_v52  ;;  %1653 = vmatpush.bf16.msra.mxu3 %v1898_v38 }
 0x385   : > { %v1803_v33 = vmul.f32 -1.442695, %v1403_v51 }
 0x387   : > { %1962 = vpow2.f32 %v1803_v33  ;;  %1654 = vmatpush.bf16.msra.mxu3 %v1897_v8 }
 0x38d   : > { %v1963_v50 = vpop.eup %1962 }
 0x38e   : > { %v1407_v53 = vadd.f32 1.0, %v1963_v50 }
 0x390   : > { %1964 = vrcp.f32 %v1407_v53  ;;  %v1419_v57 = vand.u32 2147483648, %v1407_v53  ;;  %v1417_v49 = vand.u32 2147483647, %v1407_v53  ;;  %vm1413_vm8 = vweird.f32 %v1407_v53 }
 0x392   : > { %v1420_v56 = vor.u32 1.1754944e-38, %v1419_v57  ;;  %vm1418_vm10 = vcmp.eq.f32.partialorder %v1417_v49, 8.507059e+37 }
 0x396   : > { %v1965_v31 = vpop.eup %1964 }
 0x397   : > { %v1409_v40 = vmul.f32 %v1965_v31, %v1407_v53  ;;  %vm1414_vm7 = vweird.f32 %v1965_v31 }
 0x398   : > { %vm1415_vm9 = vmor %vm1413_vm8, %vm1414_vm7 }
 0x399   : > { %v1410_v27 = vsub.f32 1.0, %v1409_v40 }
 0x39b   : > { %v1411_v30 = vmul.f32 %v1965_v31, %v1410_v27 }
 0x39d   : > { %v1412_v61 = vadd.f32 %v1965_v31, %v1411_v30 }
 0x39f   : > { %v1416_v15 = vsel %vm1415_vm9, %v1965_v31, %v1412_v61 }
 0x3a0   : > { %v1421_v60 = vsel %vm1418_vm10, %v1420_v56, %v1416_v15 }
 0x3a1   : > { %v1423_v17 = vmul.f32 %v1421_v60, %v1403_v51 }
 0x3a3   : > { %v1424_v9 = vperm.slane %v1423_v17, 0 }
 0x3a5   : > { %1429 = vperm.xlu1 %1925, %v1424_v9  }
 0x417   : > { %v1430_v0 = vpop.permute.xlu1 %1429 }
 0x418   : > { %v1432_v10 = vmul.f32 %v1431_v62, %v1430_v0 }
 0x41a   : > { %v1434_v16 = vsel %vm1433_vm12, %v1432_v10, 0.0  ;;  %v1929_v10 = vld [vmem:[%s2721_s10] ss:$0 sm:$0xff] }
 0x41b   : > { %v1435_v44 = vrot.slane %v1434_v16, 4 }
 0x41d   : > { %v1436_v23 = vadd.f32 %v1435_v44, %v1434_v16 }
 0x41f   : > { %v1437_v28 = vrot.slane %v1436_v23, 2 }
 0x421   : > { %v1438_v46 = vadd.f32 %v1437_v28, %v1436_v23  ;;  %v1661_v28 = vld [vmem:[%s2158_s12] sm:$0xff] }
 0x423   : > { %v1439_v41 = vrot.slane %v1438_v46, 1 }
 0x425   : > { %v1440_v24 = vadd.f32 %v1439_v41, %v1438_v46  ;;  %v1662_v41 = vld [vmem:[%s2158_s12 + $0x8] sm:$0xff] }
 0x427   : > { %v1442_v55 = vadd.f32 %v1441_v7, %v1440_v24 }
 0x429   : > { %v1804_v32 = vmul.f32 -1.442695, %v1442_v55 }
 0x42b   : > { %1966 = vpow2.f32 %v1804_v32 }
 0x431   : > { %v1967_v5 = vpop.eup %1966 }
 0x432   : > { %v1446_v21 = vadd.f32 1.0, %v1967_v5 }
 0x434   : > { %1968 = vrcp.f32 %v1446_v21  ;;  %v1458_v59 = vand.u32 2147483648, %v1446_v21  ;;  %v1456_v29 = vand.u32 2147483647, %v1446_v21  ;;  %vm1452_vm0 = vweird.f32 %v1446_v21 }
 0x436   : > { %v1459_v1 = vor.u32 1.1754944e-38, %v1458_v59  ;;  %vm1457_vm3 = vcmp.eq.f32.partialorder %v1456_v29, 8.507059e+37 }
 0x43a   : > { %v1969_v43 = vpop.eup %1968 }
 0x43b   : > { %v1448_v54 = vmul.f32 %v1969_v43, %v1446_v21  ;;  %vm1453_vm13 = vweird.f32 %v1969_v43 }
 0x43c   : > { %vm1454_vm1 = vmor %vm1452_vm0, %vm1453_vm13 }
 0x43d   : > { %v1449_v63 = vsub.f32 1.0, %v1448_v54 }
 0x43f   : > { %v1450_v4 = vmul.f32 %v1969_v43, %v1449_v63 }
 0x441   : > { %v1451_v45 = vadd.f32 %v1969_v43, %v1450_v4 }
 0x443   : > { %v1455_v13 = vsel %vm1454_vm1, %v1969_v43, %v1451_v45 }
 0x444   : > { %v1460_v19 = vsel %vm1457_vm3, %v1459_v1, %v1455_v13 }
 0x445   : > { %1472 = vrot.lane.b32.xlu0 %v1460_v19, %s1985_s22  ;;  %1466 = vrot.lane.b32.xlu1 %v1460_v19, %s1979_s25 }
 0x446   : > { %1463 = vrot.lane.b32.xlu2 %v1460_v19, %s1978_s23 }
 0x44d   : > { %1481 = vrot.lane.b32.xlu0 %v1460_v19, %s1981_s14  ;;  %1475 = vrot.lane.b32.xlu1 %v1460_v19, %s1983_s20  ;;  %s386_s14 = scalar_lea.vmem %s2722_s11, %s1871_s24 }
 0x44e   : > { %1469 = vrot.lane.b32.xlu2 %v1460_v19, %s1984_s21 }
 0x456   : > { %1478 = vrot.lane.b32.xlu2 %v1460_v19, %s1982_s15 }
 0x4a0   : > { %v1464_v58 = vpop.permute.xlu2 %1463 }
 0x4a1   : > { %v1484_v33 = vsel %vm611_vm2, %v1460_v19, %v1464_v58 }
 0x4a8   : > { %v1470_v36 = vpop.permute.xlu2 %1469 }
 0x4b0   : > { %v1479_v27 = vpop.permute.xlu2 %1478 }
 0x4b7   : > { %v1473_v52 = vpop.permute.xlu0 %1472  ;;  %v1467_v51 = vpop.permute.xlu1 %1466 }
 0x4b8   : > { %v1485_v50 = vsel %vm745_vm11, %v1484_v33, %v1467_v51 }
 0x4b9   : > { %v1487_v53 = vsel %vm1486_vm4, %v1485_v50, %v1470_v36 }
 0x4ba   : > { %v1489_v40 = vsel %vm1488_vm5, %v1487_v53, %v1473_v52 }
 0x4bf   : > { %v1476_v31 = vpop.permute.xlu1 %1475  ;;  %v1482_v30 = vpop.permute.xlu0 %1481 }
 0x4c0   : > { %v1491_v57 = vsel %vm1490_vm6, %v1489_v40, %v1476_v31 }
 0x4c1   : > { %v1492_v49 = vsel %vm774_vm15, %v1491_v57, %v1479_v27 }
 0x4c2   : > { %v1493_v61 = vsel %vm724_vm14, %v1492_v49, %v1482_v30 }
 0x4c3   : > { %v1494_v56 = vperm.slane %v1493_v61, 0 }
 0x4c5   : > { %v1495_v15 = vmul.f32 %v1494_v56, %v2558_v2  ;;  %v1497_v60 = vmul.f32 %v1494_v56, %v2561_v6  ;;  %v1496_v17 = vmul.f32 %v1494_v56, %v2566_v11  ;;  %v1498_v9 = vmul.f32 %v1494_v56, %v2569_v14 }
 0x4c7   : > { %v1499_v62 = vpack.c.bf16 %v1497_v60, %v1495_v15  ;;  %v1500_v0 = vpack.c.bf16 %v1498_v9, %v1496_v17 }
 0x4c9   : > { %1641 = vmatmul.bf16.vlgmr.msra.gmra.mxu2 %v1499_v62  ;;  %1655 = vmatmul.bf16.vlgmr.msra.gmra.mxu3 %v1500_v0 }
 0x54c   : > { %v1642_v16 = vpop.f32.mrf.mxu2  ;;  %v1656_v44 = vpop.f32.mrf.mxu3 }
 0x54d   : > { %v1643_v23 = vadd.f32 %v1929_v10, %v1642_v16 }
 0x54f   : > { %v1657_v2 = vadd.f32 %v1656_v44, %v1643_v23 }
 0x551   : > { %v1663_v6 = vadd.f32 %v1661_v28, %v1657_v2 }
 0x553   : > { %1665 = vst [vmem:[%s386_s14] sm:$0xff] %v1663_v6 }
 0x554   : > { %v1644_v11 = vpop.f32.mrf.mxu2  ;;  %v1658_v46 = vpop.f32.mrf.mxu3 }
 0x555   : > { %v1645_v14 = vadd.f32 %v1929_v10, %v1644_v11 }
 0x557   : > { %v1659_v7 = vadd.f32 %v1658_v46, %v1645_v14 }
 0x559   : > { %v1664_v24 = vadd.f32 %v1662_v41, %v1659_v7 }
 0x55b   : > { %1666 = vst [vmem:[%s386_s14 + $0x8] sm:$0xff] %v1664_v24 }
 0x55c PF: > { %s21_s17 = sadd.s32 1, %s1976_s17  }
 0x55d   : > { %p18_p4 = scmp.ge.s32.totalorder %s21_s17, 4  }
 0x55f   :  { %20 = sbr.rel (!%p18_p4) target bundleno = 1 (0x1), region = 95 }

</bundles_post_ra>
